<compile_context>
chip_gen: v7x
topology: tpu7x:2x2x1
jax: 0.10.0
libtpu: 0.0.40
codegen_flags: <defaults>
</compile_context>

<pallas_src>
import jax
import jax.numpy as jnp
from jax.experimental import pallas as pl
from jax.experimental.pallas import tpu as pltpu

BN_EPS = 1e-5
LRELU_SLOPE = 0.2


# ---------------------------------------------------------------------------
# Pallas kernels
# ---------------------------------------------------------------------------
def _dense_kernel(x_ref, w_ref, o_ref):
    # Layer 1 (1x1 spatial input): plain dense matmul, lane-dense (B, Cout*16).
    o_ref[...] = jnp.dot(x_ref[...], w_ref[...], preferred_element_type=jnp.float32)


def _conv_stats_kernel(p_ref, w_ref, z_ref, s_ref):
    # z(Cout, tm) = W(Cout, K) @ P(K, tm) on the MXU (bf16 in, f32 accumulate),
    # plus per-tile BN partial sums (two-pass batch-norm, pass 1).
    z = jnp.dot(w_ref[...], p_ref[...], preferred_element_type=jnp.float32)
    z_ref[...] = z
    s_ref[:, 0:1] = jnp.sum(z, axis=-1, keepdims=True)
    s_ref[:, 1:2] = jnp.sum(z * z, axis=-1, keepdims=True)


def _affine_lrelu_kernel(z_ref, s_ref, t_ref, o_ref):
    # y = LeakyReLU(z * s + t); s/t broadcast per-row (C,1) or per-column (1,N).
    y = z_ref[...] * s_ref[...] + t_ref[...]
    o_ref[...] = jnp.where(y >= 0.0, y, LRELU_SLOPE * y)


def _conv_bias_sigmoid_kernel(p_ref, w_ref, b_ref, o_ref):
    # Final layer: z(Cout, tm) = W @ P, + per-channel bias, sigmoid.
    y = jnp.dot(w_ref[...], p_ref[...], preferred_element_type=jnp.float32)
    o_ref[...] = jax.nn.sigmoid(y + b_ref[...])


# ---------------------------------------------------------------------------
# Pallas call wrappers
# ---------------------------------------------------------------------------
def _pick_tm(m, cap=2048):
    if m <= cap:
        return m
    for d in (2048, 1024, 512, 256, 128):
        if d <= cap and m % d == 0:
            return d
    return m


def _phase_conv(patches, w_phases):
    # patches: (4, K, M) bf16,  w_phases: (4, Cout, K) bf16
    _, K, M = patches.shape
    Cout = w_phases.shape[1]
    tm = _pick_tm(M)
    n_mt = M // tm
    z, stats = pl.pallas_call(
        _conv_stats_kernel,
        out_shape=(
            jax.ShapeDtypeStruct((4, Cout, M), jnp.float32),
            jax.ShapeDtypeStruct((4, n_mt, Cout, 2), jnp.float32),
        ),
        grid_spec=pltpu.PrefetchScalarGridSpec(
            num_scalar_prefetch=0,
            grid=(4, n_mt),
            in_specs=[
                pl.BlockSpec((None, K, tm), lambda p, m: (p, 0, m)),
                pl.BlockSpec((None, Cout, K), lambda p, m: (p, 0, 0)),
            ],
            out_specs=[
                pl.BlockSpec((None, Cout, tm), lambda p, m: (p, 0, m)),
                pl.BlockSpec((None, None, Cout, 2), lambda p, m: (p, m, 0, 0)),
            ],
        ),
        compiler_params=pltpu.CompilerParams(
            dimension_semantics=("parallel", "parallel")),
    )(patches, w_phases)
    return z, stats


def _phase_bn_lrelu(z, scale, shift):
    # z: (4, Cout, M) f32; scale/shift: (Cout,) f32 (BN folded with gamma/beta).
    _, Cout, M = z.shape
    tm = _pick_tm(M)
    return pl.pallas_call(
        _affine_lrelu_kernel,
        out_shape=jax.ShapeDtypeStruct(z.shape, jnp.float32),
        grid_spec=pltpu.PrefetchScalarGridSpec(
            num_scalar_prefetch=0,
            grid=(4, M // tm),
            in_specs=[
                pl.BlockSpec((None, Cout, tm), lambda p, m: (p, 0, m)),
                pl.BlockSpec((Cout, 1), lambda p, m: (0, 0)),
                pl.BlockSpec((Cout, 1), lambda p, m: (0, 0)),
            ],
            out_specs=pl.BlockSpec((None, Cout, tm), lambda p, m: (p, 0, m)),
        ),
        compiler_params=pltpu.CompilerParams(
            dimension_semantics=("parallel", "parallel")),
    )(z, scale.reshape(Cout, 1), shift.reshape(Cout, 1))


def _phase_conv_bias_sigmoid(patches, w_phases, bias):
    # patches: (4, K, M) bf16, w_phases: (4, Cout, K) bf16, bias: (Cout,) f32.
    _, K, M = patches.shape
    Cout = w_phases.shape[1]
    tm = _pick_tm(M)
    return pl.pallas_call(
        _conv_bias_sigmoid_kernel,
        out_shape=jax.ShapeDtypeStruct((4, Cout, M), jnp.float32),
        grid_spec=pltpu.PrefetchScalarGridSpec(
            num_scalar_prefetch=0,
            grid=(4, M // tm),
            in_specs=[
                pl.BlockSpec((None, K, tm), lambda p, m: (p, 0, m)),
                pl.BlockSpec((None, Cout, K), lambda p, m: (p, 0, 0)),
                pl.BlockSpec((Cout, 1), lambda p, m: (0, 0)),
            ],
            out_specs=pl.BlockSpec((None, Cout, tm), lambda p, m: (p, 0, m)),
        ),
        compiler_params=pltpu.CompilerParams(
            dimension_semantics=("parallel", "parallel")),
    )(patches, w_phases, bias.reshape(Cout, 1))


# ---------------------------------------------------------------------------
# JAX glue: phase decomposition of ConvTranspose2d(k=4, s=2, p=1)
# ---------------------------------------------------------------------------
def _phase_patches(x_nchw):
    # x: (B, Cin, H, W) -> patches (4, 4*Cin, B*H*W), zero-free (no dilation).
    # Phase (pr, pc) produces output pixels (2i+pr, 2j+pc); each is a 2x2 conv.
    B, C, H, W = x_nchw.shape
    xp = jnp.pad(x_nchw, ((0, 0), (0, 0), (1, 1), (1, 1)))
    xp = jnp.transpose(xp, (1, 0, 2, 3))          # (Cin, B, H+2, W+2)
    phases = []
    for pr in (0, 1):
        for pc in (0, 1):
            taps = [xp[:, :, pr + dr:pr + dr + H, pc + dc:pc + dc + W]
                    for dr in (0, 1) for dc in (0, 1)]
            ph = jnp.stack(taps, axis=0)          # (4 taps, Cin, B, H, W)
            phases.append(ph.reshape(4 * C, B * H * W))
    return jnp.stack(phases, axis=0)              # (4, 4*Cin, B*H*W)


def _phase_to_nchw(z, B, H, W):
    # z: (4, Cout, B*H*W), phase q = 2*pr + pc -> output pixel (2i+pr, 2j+pc).
    Cout = z.shape[1]
    z = z.reshape(2, 2, Cout, B, H, W)
    y = jnp.transpose(z, (3, 2, 4, 0, 5, 1))      # (B, Cout, H, pr, W, pc)
    return y.reshape(B, Cout, 2 * H, 2 * W)


def _prep_stride2_weight(w_t, dtype=jnp.bfloat16):
    # PyTorch ConvTranspose2d weight (Cin, Cout, 4, 4) -> (4 phases, Cout, 4*Cin).
    # Phase (pr, pc), window tap (dr, dc) uses kernel tap (3-pr-2dr, 3-pc-2dc).
    cin, cout = w_t.shape[0], w_t.shape[1]
    phases = []
    for pr in (0, 1):
        for pc in (0, 1):
            taps = [w_t[:, :, 3 - pr - 2 * dr, 3 - pc - 2 * dc]
                    for dr in (0, 1) for dc in (0, 1)]
            wp = jnp.stack(taps, axis=0).reshape(4 * cin, cout)   # (K, Cout)
            phases.append(wp.T)                                    # (Cout, K)
    return jnp.stack(phases, axis=0).astype(dtype)


def prepare_decoder_params(params):
    # One-time weight layout work (hoisted out of the forward pass).
    return {
        "w1m": params["w1"].reshape(params["w1"].shape[0], -1).astype(jnp.bfloat16),
        "g1": params["g1"], "b1": params["b1"],
        "w2p": _prep_stride2_weight(params["w2"]), "g2": params["g2"], "b2": params["b2"],
        "w3p": _prep_stride2_weight(params["w3"]), "g3": params["g3"], "b3": params["b3"],
        "w4p": _prep_stride2_weight(params["w4"]), "g4": params["g4"], "b4": params["b4"],
        "w5p": _prep_stride2_weight(params["w5"]), "bias5": params["bias5"].astype(jnp.float32),
    }


# ---------------------------------------------------------------------------
# Layers
# ---------------------------------------------------------------------------
def _upconv1_bn_lrelu(vec, w1m, gamma, beta):
    # ConvTranspose2d(dim, Cout, 4, 1, 0) on a 1x1 input == dense layer.
    B = vec.shape[0]
    cout = gamma.shape[0]
    z1 = pl.pallas_call(
        _dense_kernel,
        out_shape=jax.ShapeDtypeStruct((B, cout * 16), jnp.float32),
    )(vec.astype(jnp.bfloat16), w1m)                       # columns = (co, i, j)
    # BN batch stats per channel (tiny: (B, Cout*16)) -> folded scale/shift.
    zc = z1.reshape(B, cout, 16)
    mean = jnp.mean(zc, axis=(0, 2))
    var = jnp.maximum(jnp.mean(jnp.square(zc), axis=(0, 2)) - jnp.square(mean), 0.0)
    scale = gamma * jax.lax.rsqrt(var + BN_EPS)
    shift = beta - mean * scale
    s_cols = jnp.repeat(scale, 16).reshape(1, cout * 16)
    t_cols = jnp.repeat(shift, 16).reshape(1, cout * 16)
    y1 = pl.pallas_call(
        _affine_lrelu_kernel,
        out_shape=jax.ShapeDtypeStruct((B, cout * 16), jnp.float32),
    )(z1, s_cols, t_cols)
    return y1.reshape(B, cout, 4, 4)


def _upconv_bn_lrelu(x_nchw, w_phases, gamma, beta):
    B, _, H, W = x_nchw.shape
    patches = _phase_patches(x_nchw).astype(jnp.bfloat16)
    z, stats = _phase_conv(patches, w_phases)              # z: (4, Cout, B*H*W)
    M = z.shape[2]
    inv_cnt = 1.0 / (4.0 * M)                              # N*OH*OW samples/channel
    mean = jnp.sum(stats[..., 0], axis=(0, 1)) * inv_cnt
    var = jnp.maximum(jnp.sum(stats[..., 1], axis=(0, 1)) * inv_cnt
                      - jnp.square(mean), 0.0)
    scale = gamma * jax.lax.rsqrt(var + BN_EPS)
    shift = beta - mean * scale
    y = _phase_bn_lrelu(z, scale, shift)
    return _phase_to_nchw(y, B, H, W)


def _upconv_sigmoid(x_nchw, w_phases, bias):
    B, _, H, W = x_nchw.shape
    patches = _phase_patches(x_nchw).astype(jnp.bfloat16)
    y = _phase_conv_bias_sigmoid(patches, w_phases, bias)
    return _phase_to_nchw(y, B, H, W)


# ---------------------------------------------------------------------------
# decoder.forward
# ---------------------------------------------------------------------------
def decoder_forward(prepped, vec, skip):
    B = vec.shape[0]
    p = prepped
    d1 = _upconv1_bn_lrelu(vec.reshape(B, -1), p["w1m"], p["g1"], p["b1"])
    d2 = _upconv_bn_lrelu(jnp.concatenate([d1, skip[3]], axis=1), p["w2p"], p["g2"], p["b2"])
    d3 = _upconv_bn_lrelu(jnp.concatenate([d2, skip[2]], axis=1), p["w3p"], p["g3"], p["b3"])
    d4 = _upconv_bn_lrelu(jnp.concatenate([d3, skip[1]], axis=1), p["w4p"], p["g4"], p["b4"])
    out = _upconv_sigmoid(jnp.concatenate([d4, skip[0]], axis=1), p["w5p"], p["bias5"])
    return out, [d1, d2, d3, d4]


def init_params(key, dim, nf, nc):
    ks = jax.random.split(key, 14)
    w = lambda k, s: 0.05 * jax.random.normal(k, s, jnp.float32)
    g = lambda k, c: 1.0 + 0.1 * jax.random.normal(k, (c,), jnp.float32)
    b = lambda k, c: 0.1 * jax.random.normal(k, (c,), jnp.float32)
    return {
        "w1": w(ks[0], (dim, nf * 8, 4, 4)), "g1": g(ks[1], nf * 8), "b1": b(ks[2], nf * 8),
        "w2": w(ks[3], (nf * 16, nf * 4, 4, 4)), "g2": g(ks[4], nf * 4), "b2": b(ks[5], nf * 4),
        "w3": w(ks[6], (nf * 8, nf * 2, 4, 4)), "g3": g(ks[7], nf * 2), "b3": b(ks[8], nf * 2),
        "w4": w(ks[9], (nf * 4, nf, 4, 4)), "g4": g(ks[10], nf), "b4": b(ks[11], nf),
        "w5": w(ks[12], (nf * 2, nc, 4, 4)), "bias5": b(ks[13], nc),
    }


# ---------------------------------------------------------------------------
# Pure-JAX reference (PyTorch semantics) for a numerical cross-check.
# Matmul operands cast to bf16 exactly like the kernels (f32 accumulation).
# ---------------------------------------------------------------------------
def _ref_convT(x, w, stride, padding):
    B, Cin, H, W = x.shape
    k = w.shape[2]
    if stride > 1:
        xd = jnp.zeros((B, Cin, (H - 1) * stride + 1, (W - 1) * stride + 1), x.dtype)
        xd = xd.at[:, :, ::stride, ::stride].set(x)
    else:
        xd = x
    pad = k - 1 - padding
    xd = jnp.pad(xd, ((0, 0), (0, 0), (pad, pad), (pad, pad)))
    wf = jnp.transpose(jnp.flip(w, (2, 3)), (1, 0, 2, 3))       # (Cout, Cin, k, k)
    return jax.lax.conv_general_dilated(
        xd.astype(jnp.bfloat16), wf.astype(jnp.bfloat16),
        window_strides=(1, 1), padding="VALID",
        dimension_numbers=("NCHW", "OIHW", "NCHW"),
        preferred_element_type=jnp.float32)


def _ref_bn_lrelu(z, gamma, beta):
    mean = jnp.mean(z, axis=(0, 2, 3), keepdims=True)
    var = jnp.mean(jnp.square(z - mean), axis=(0, 2, 3), keepdims=True)
    y = (z - mean) * jax.lax.rsqrt(var + BN_EPS)
    y = y * gamma.reshape(1, -1, 1, 1) + beta.reshape(1, -1, 1, 1)
    return jnp.where(y >= 0.0, y, LRELU_SLOPE * y)


def decoder_reference(params, vec, skip):
    B = vec.shape[0]
    d1 = _ref_bn_lrelu(_ref_convT(vec.reshape(B, -1, 1, 1), params["w1"], 1, 0),
                       params["g1"], params["b1"])
    d2 = _ref_bn_lrelu(_ref_convT(jnp.concatenate([d1, skip[3]], 1), params["w2"], 2, 1),
                       params["g2"], params["b2"])
    d3 = _ref_bn_lrelu(_ref_convT(jnp.concatenate([d2, skip[2]], 1), params["w3"], 2, 1),
                       params["g3"], params["b3"])
    d4 = _ref_bn_lrelu(_ref_convT(jnp.concatenate([d3, skip[1]], 1), params["w4"], 2, 1),
                       params["g4"], params["b4"])
    z5 = _ref_convT(jnp.concatenate([d4, skip[0]], 1), params["w5"], 2, 1)
    z5 = z5 + params["bias5"].reshape(1, -1, 1, 1)
    return jax.nn.sigmoid(z5), [d1, d2, d3, d4]


if __name__ == "__main__":
    B, dim, nf, nc = 2, 32, 8, 1
    key = jax.random.PRNGKey(0)
    kp, kv, k0, k1, k2, k3 = jax.random.split(key, 6)

    params = init_params(kp, dim, nf, nc)
    vec = jax.random.normal(kv, (B, dim), jnp.float32)
    skip = [
        jax.random.normal(k0, (B, nf, 32, 32), jnp.float32),      # skip[0]
        jax.random.normal(k1, (B, nf * 2, 16, 16), jnp.float32),  # skip[1]
        jax.random.normal(k2, (B, nf * 4, 8, 8), jnp.float32),    # skip[2]
        jax.random.normal(k3, (B, nf * 8, 4, 4), jnp.float32),    # skip[3]
    ]

    prepped = prepare_decoder_params(params)   # one-time weight layout work

    fwd = jax.jit(decoder_forward)
    out, ds = fwd(prepped, vec, skip)
    jax.block_until_ready(out)

    assert out.shape == (B, nc, 64, 64)
    assert ds[0].shape == (B, nf * 8, 4, 4)
    assert ds[1].shape == (B, nf * 4, 8, 8)
    assert ds[2].shape == (B, nf * 2, 16, 16)
    assert ds[3].shape == (B, nf, 32, 32)
    assert bool(jnp.all(jnp.isfinite(out)))
    assert bool(jnp.all((out >= 0.0) & (out <= 1.0)))  # sigmoid range

    # Cross-check against the pure-JAX reference (same bf16 matmul precision).
    out_ref, ds_ref = jax.jit(decoder_reference)(params, vec, skip)
    err = float(jnp.max(jnp.abs(out - out_ref)))
    assert err < 1e-2, f"output mismatch vs reference: {err}"
    for a, b in zip(ds, ds_ref):
        err = float(jnp.max(jnp.abs(a - b)))
        assert err < 2e-2, f"intermediate mismatch vs reference: {err}"

    print("KERNEL_OK")
</pallas_src>

<mosaic_0001>
module attributes {stable_mosaic.version = 11 : i64} {
  func.func @_dense_kernel(%arg0: memref<2x32xbf16, #tpu.memory_space<vmem>>, %arg1: memref<32x1024xbf16, #tpu.memory_space<vmem>>, %arg2: memref<2x1024xf32, #tpu.memory_space<vmem>>) attributes {dimension_semantics = [], scalar_prefetch = 0 : i64, scratch_operands = 0 : i64, tpu.core_type = #tpu.core_type<tc>} {
    %c0 = arith.constant 0 : index
    %c0_0 = arith.constant 0 : index
    %0 = vector.load %arg0[%c0, %c0_0] : memref<2x32xbf16, #tpu.memory_space<vmem>>, vector<2x32xbf16>
    %c0_1 = arith.constant 0 : index
    %c0_2 = arith.constant 0 : index
    %1 = vector.load %arg1[%c0_1, %c0_2] : memref<32x1024xbf16, #tpu.memory_space<vmem>>, vector<32x1024xbf16>
    %cst = arith.constant dense<0.000000e+00> : vector<2x1024xf32>
    %2 = tpu.matmul %0, %1, %cst {dimension_numbers = #tpu.dot_dimension_numbers<[1], [0], [0], [1], [0, 0, 1, 1], [], []>} : vector<2x32xbf16>, vector<32x1024xbf16>, vector<2x1024xf32> -> vector<2x1024xf32>
    %c0_3 = arith.constant 0 : index
    %c0_4 = arith.constant 0 : index
    %3 = vector.load %arg2[%c0_3, %c0_4] : memref<2x1024xf32, #tpu.memory_space<vmem>>, vector<2x1024xf32>
    tpu.vector_store %arg2[%c0_3, %c0_4], %2 {strides = array<i32>} : memref<2x1024xf32, #tpu.memory_space<vmem>>, vector<2x1024xf32>,
    return
  }
}

module attributes {stable_mosaic.version = 11 : i64} {
  func.func @_affine_lrelu_kernel(%arg0: memref<2x1024xf32, #tpu.memory_space<vmem>>, %arg1: memref<1x1024xf32, #tpu.memory_space<vmem>>, %arg2: memref<1x1024xf32, #tpu.memory_space<vmem>>, %arg3: memref<2x1024xf32, #tpu.memory_space<vmem>>) attributes {dimension_semantics = [], scalar_prefetch = 0 : i64, scratch_operands = 0 : i64, tpu.core_type = #tpu.core_type<tc>} {
    %c0 = arith.constant 0 : index
    %c0_0 = arith.constant 0 : index
    %0 = vector.load %arg0[%c0, %c0_0] : memref<2x1024xf32, #tpu.memory_space<vmem>>, vector<2x1024xf32>
    %c0_1 = arith.constant 0 : index
    %c0_2 = arith.constant 0 : index
    %1 = vector.load %arg1[%c0_1, %c0_2] : memref<1x1024xf32, #tpu.memory_space<vmem>>, vector<1x1024xf32>
    %2 = vector.broadcast %1 : vector<1x1024xf32> to vector<2x1024xf32>
    %3 = arith.mulf %0, %2 : vector<2x1024xf32>
    %c0_3 = arith.constant 0 : index
    %c0_4 = arith.constant 0 : index
    %4 = vector.load %arg2[%c0_3, %c0_4] : memref<1x1024xf32, #tpu.memory_space<vmem>>, vector<1x1024xf32>
    %5 = vector.broadcast %4 : vector<1x1024xf32> to vector<2x1024xf32>
    %6 = arith.addf %3, %5 : vector<2x1024xf32>
    %cst = arith.constant 0.000000e+00 : f32
    %7 = vector.broadcast %cst : f32 to vector<2x1024xf32>
    %8 = arith.cmpf oge, %6, %7 : vector<2x1024xf32>
    %cst_5 = arith.constant 2.000000e-01 : f32
    %9 = vector.broadcast %cst_5 : f32 to vector<2x1024xf32>
    %10 = arith.mulf %9, %6 : vector<2x1024xf32>
    %11 = arith.select %8, %6, %10 : vector<2x1024xi1>, vector<2x1024xf32>
    %c0_6 = arith.constant 0 : index
    %c0_7 = arith.constant 0 : index
    %12 = vector.load %arg3[%c0_6, %c0_7] : memref<2x1024xf32, #tpu.memory_space<vmem>>, vector<2x1024xf32>
    tpu.vector_store %arg3[%c0_6, %c0_7], %11 {strides = array<i32>} : memref<2x1024xf32, #tpu.memory_space<vmem>>, vector<2x1024xf32>,
    return
  }
}

module attributes {stable_mosaic.version = 11 : i64} {
  func.func @_conv_stats_kernel(%arg0: i32, %arg1: i32, %arg2: memref<1x512x32xbf16, #tpu.memory_space<vmem>>, %arg3: memref<1x32x512xbf16, #tpu.memory_space<vmem>>, %arg4: memref<1x32x32xf32, #tpu.memory_space<vmem>>, %arg5: memref<1x1x32x2xf32, #tpu.memory_space<vmem>>) attributes {dimension_semantics = [#tpu.dimension_semantics<parallel>, #tpu.dimension_semantics<parallel>], iteration_bounds = array<i64: 4, 1>, scalar_prefetch = 0 : i64, scratch_operands = 0 : i64, tpu.core_type = #tpu.core_type<tc>, window_params = [{transform_indices = @transform_0, window_bounds = array<i64: 1, 512, 32>}, {transform_indices = @transform_1, window_bounds = array<i64: 1, 32, 512>}, {transform_indices = @transform_2, window_bounds = array<i64: 1, 32, 32>}, {transform_indices = @transform_3, window_bounds = array<i64: 1, 1, 32, 2>}]} {
    %c0 = arith.constant 0 : index
    %c0_0 = arith.constant 0 : index
    %c0_1 = arith.constant 0 : index
    %0 = vector.load %arg3[%c0, %c0_0, %c0_1] : memref<1x32x512xbf16, #tpu.memory_space<vmem>>, vector<1x32x512xbf16>
    %1 = vector.shape_cast %0 : vector<1x32x512xbf16> to vector<32x512xbf16>
    %c0_2 = arith.constant 0 : index
    %c0_3 = arith.constant 0 : index
    %c0_4 = arith.constant 0 : index
    %2 = vector.load %arg2[%c0_2, %c0_3, %c0_4] : memref<1x512x32xbf16, #tpu.memory_space<vmem>>, vector<1x512x32xbf16>
    %3 = vector.shape_cast %2 : vector<1x512x32xbf16> to vector<512x32xbf16>
    %cst = arith.constant dense<0.000000e+00> : vector<32x32xf32>
    %4 = tpu.matmul %1, %3, %cst {dimension_numbers = #tpu.dot_dimension_numbers<[1], [0], [0], [1], [0, 0, 1, 1], [], []>} : vector<32x512xbf16>, vector<512x32xbf16>, vector<32x32xf32> -> vector<32x32xf32>
    %c0_5 = arith.constant 0 : index
    %c0_6 = arith.constant 0 : index
    %c0_7 = arith.constant 0 : index
    %5 = vector.load %arg4[%c0_5, %c0_6, %c0_7] : memref<1x32x32xf32, #tpu.memory_space<vmem>>, vector<1x32x32xf32>
    %6 = vector.shape_cast %5 : vector<1x32x32xf32> to vector<32x32xf32>
    %7 = vector.shape_cast %4 : vector<32x32xf32> to vector<1x32x32xf32>
    tpu.vector_store %arg4[%c0_5, %c0_6, %c0_7], %7 {strides = array<i32>} : memref<1x32x32xf32, #tpu.memory_space<vmem>>, vector<1x32x32xf32>,
    %cst_8 = arith.constant dense<0.000000e+00> : vector<32xf32>
    %8 = vector.multi_reduction <add>, %4, %cst_8 [1] : vector<32x32xf32> to vector<32xf32>
    %9 = vector.shape_cast %8 : vector<32xf32> to vector<32x1xf32>
    %c0_9 = arith.constant 0 : index
    %c0_10 = arith.constant 0 : index
    %c0_11 = arith.constant 0 : index
    %c0_12 = arith.constant 0 : index
    %10 = vector.load %arg5[%c0_9, %c0_10, %c0_11, %c0_12] : memref<1x1x32x2xf32, #tpu.memory_space<vmem>>, vector<1x1x32x1xf32>
    %11 = vector.shape_cast %10 : vector<1x1x32x1xf32> to vector<32x1xf32>
    %12 = vector.shape_cast %9 : vector<32x1xf32> to vector<1x1x32x1xf32>
    tpu.vector_store %arg5[%c0_9, %c0_10, %c0_11, %c0_12], %12 {strides = array<i32>} : memref<1x1x32x2xf32, #tpu.memory_space<vmem>>, vector<1x1x32x1xf32>,
    %13 = arith.mulf %4, %4 : vector<32x32xf32>
    %cst_13 = arith.constant dense<0.000000e+00> : vector<32xf32>
    %14 = vector.multi_reduction <add>, %13, %cst_13 [1] : vector<32x32xf32> to vector<32xf32>
    %15 = vector.shape_cast %14 : vector<32xf32> to vector<32x1xf32>
    %c0_14 = arith.constant 0 : index
    %c0_15 = arith.constant 0 : index
    %c0_16 = arith.constant 0 : index
    %c1 = arith.constant 1 : index
    %16 = vector.load %arg5[%c0_14, %c0_15, %c0_16, %c1] : memref<1x1x32x2xf32, #tpu.memory_space<vmem>>, vector<1x1x32x1xf32>
    %17 = vector.shape_cast %16 : vector<1x1x32x1xf32> to vector<32x1xf32>
    %18 = vector.shape_cast %15 : vector<32x1xf32> to vector<1x1x32x1xf32>
    tpu.vector_store %arg5[%c0_14, %c0_15, %c0_16, %c1], %18 {strides = array<i32>} : memref<1x1x32x2xf32, #tpu.memory_space<vmem>>, vector<1x1x32x1xf32>,
    return
  }
  func.func @transform_0(%arg0: i32, %arg1: i32) -> (i32, i32, i32) {
    %c0_i32 = arith.constant 0 : i32
    %c0_i32_0 = arith.constant 0 : i32
    return %arg0, %c0_i32, %arg1 : i32, i32, i32
  }
  func.func @transform_1(%arg0: i32, %arg1: i32) -> (i32, i32, i32) {
    %c0_i32 = arith.constant 0 : i32
    %c0_i32_0 = arith.constant 0 : i32
    %c0_i32_1 = arith.constant 0 : i32
    return %arg0, %c0_i32, %c0_i32_0 : i32, i32, i32
  }
  func.func @transform_2(%arg0: i32, %arg1: i32) -> (i32, i32, i32) {
    %c0_i32 = arith.constant 0 : i32
    %c0_i32_0 = arith.constant 0 : i32
    return %arg0, %c0_i32, %arg1 : i32, i32, i32
  }
  func.func @transform_3(%arg0: i32, %arg1: i32) -> (i32, i32, i32, i32) {
    %c0_i32 = arith.constant 0 : i32
    %c0_i32_0 = arith.constant 0 : i32
    %c0_i32_1 = arith.constant 0 : i32
    return %arg0, %arg1, %c0_i32, %c0_i32_0 : i32, i32, i32, i32
  }
}

module attributes {stable_mosaic.version = 11 : i64} {
  func.func @_affine_lrelu_kernel(%arg0: i32, %arg1: i32, %arg2: memref<1x32x32xf32, #tpu.memory_space<vmem>>, %arg3: memref<32x1xf32, #tpu.memory_space<vmem>>, %arg4: memref<32x1xf32, #tpu.memory_space<vmem>>, %arg5: memref<1x32x32xf32, #tpu.memory_space<vmem>>) attributes {dimension_semantics = [#tpu.dimension_semantics<parallel>, #tpu.dimension_semantics<parallel>], iteration_bounds = array<i64: 4, 1>, scalar_prefetch = 0 : i64, scratch_operands = 0 : i64, tpu.core_type = #tpu.core_type<tc>, window_params = [{transform_indices = @transform_0, window_bounds = array<i64: 1, 32, 32>}, {pipeline_mode = #tpu.pipeline_mode<synchronous>, transform_indices = @transform_1, window_bounds = array<i64: 32, 1>}, {pipeline_mode = #tpu.pipeline_mode<synchronous>, transform_indices = @transform_2, window_bounds = array<i64: 32, 1>}, {transform_indices = @transform_3, window_bounds = array<i64: 1, 32, 32>}]} {
    %c0 = arith.constant 0 : index
    %c0_0 = arith.constant 0 : index
    %c0_1 = arith.constant 0 : index
    %0 = vector.load %arg2[%c0, %c0_0, %c0_1] : memref<1x32x32xf32, #tpu.memory_space<vmem>>, vector<1x32x32xf32>
    %1 = vector.shape_cast %0 : vector<1x32x32xf32> to vector<32x32xf32>
    %c0_2 = arith.constant 0 : index
    %c0_3 = arith.constant 0 : index
    %2 = vector.load %arg3[%c0_2, %c0_3] : memref<32x1xf32, #tpu.memory_space<vmem>>, vector<32x1xf32>
    %3 = vector.broadcast %2 : vector<32x1xf32> to vector<32x32xf32>
    %4 = arith.mulf %1, %3 : vector<32x32xf32>
    %c0_4 = arith.constant 0 : index
    %c0_5 = arith.constant 0 : index
    %5 = vector.load %arg4[%c0_4, %c0_5] : memref<32x1xf32, #tpu.memory_space<vmem>>, vector<32x1xf32>
    %6 = vector.broadcast %5 : vector<32x1xf32> to vector<32x32xf32>
    %7 = arith.addf %4, %6 : vector<32x32xf32>
    %cst = arith.constant 0.000000e+00 : f32
    %8 = vector.broadcast %cst : f32 to vector<32x32xf32>
    %9 = arith.cmpf oge, %7, %8 : vector<32x32xf32>
    %cst_6 = arith.constant 2.000000e-01 : f32
    %10 = vector.broadcast %cst_6 : f32 to vector<32x32xf32>
    %11 = arith.mulf %10, %7 : vector<32x32xf32>
    %12 = arith.select %9, %7, %11 : vector<32x32xi1>, vector<32x32xf32>
    %c0_7 = arith.constant 0 : index
    %c0_8 = arith.constant 0 : index
    %c0_9 = arith.constant 0 : index
    %13 = vector.load %arg5[%c0_7, %c0_8, %c0_9] : memref<1x32x32xf32, #tpu.memory_space<vmem>>, vector<1x32x32xf32>
    %14 = vector.shape_cast %13 : vector<1x32x32xf32> to vector<32x32xf32>
    %15 = vector.shape_cast %12 : vector<32x32xf32> to vector<1x32x32xf32>
    tpu.vector_store %arg5[%c0_7, %c0_8, %c0_9], %15 {strides = array<i32>} : memref<1x32x32xf32, #tpu.memory_space<vmem>>, vector<1x32x32xf32>,
    return
  }
  func.func @transform_0(%arg0: i32, %arg1: i32) -> (i32, i32, i32) {
    %c0_i32 = arith.constant 0 : i32
    %c0_i32_0 = arith.constant 0 : i32
    return %arg0, %c0_i32, %arg1 : i32, i32, i32
  }
  func.func @transform_1(%arg0: i32, %arg1: i32) -> (i32, i32) {
    %c0_i32 = arith.constant 0 : i32
    %c0_i32_0 = arith.constant 0 : i32
    %c0_i32_1 = arith.constant 0 : i32
    return %c0_i32, %c0_i32_0 : i32, i32
  }
  func.func @transform_2(%arg0: i32, %arg1: i32) -> (i32, i32) {
    %c0_i32 = arith.constant 0 : i32
    %c0_i32_0 = arith.constant 0 : i32
    %c0_i32_1 = arith.constant 0 : i32
    return %c0_i32, %c0_i32_0 : i32, i32
  }
  func.func @transform_3(%arg0: i32, %arg1: i32) -> (i32, i32, i32) {
    %c0_i32 = arith.constant 0 : i32
    %c0_i32_0 = arith.constant 0 : i32
    return %arg0, %c0_i32, %arg1 : i32, i32, i32
  }
}

module attributes {stable_mosaic.version = 11 : i64} {
  func.func @_conv_stats_kernel(%arg0: i32, %arg1: i32, %arg2: memref<1x256x128xbf16, #tpu.memory_space<vmem>>, %arg3: memref<1x16x256xbf16, #tpu.memory_space<vmem>>, %arg4: memref<1x16x128xf32, #tpu.memory_space<vmem>>, %arg5: memref<1x1x16x2xf32, #tpu.memory_space<vmem>>) attributes {dimension_semantics = [#tpu.dimension_semantics<parallel>, #tpu.dimension_semantics<parallel>], iteration_bounds = array<i64: 4, 1>, scalar_prefetch = 0 : i64, scratch_operands = 0 : i64, tpu.core_type = #tpu.core_type<tc>, window_params = [{transform_indices = @transform_0, window_bounds = array<i64: 1, 256, 128>}, {transform_indices = @transform_1, window_bounds = array<i64: 1, 16, 256>}, {transform_indices = @transform_2, window_bounds = array<i64: 1, 16, 128>}, {transform_indices = @transform_3, window_bounds = array<i64: 1, 1, 16, 2>}]} {
    %c0 = arith.constant 0 : index
    %c0_0 = arith.constant 0 : index
    %c0_1 = arith.constant 0 : index
    %0 = vector.load %arg3[%c0, %c0_0, %c0_1] : memref<1x16x256xbf16, #tpu.memory_space<vmem>>, vector<1x16x256xbf16>
    %1 = vector.shape_cast %0 : vector<1x16x256xbf16> to vector<16x256xbf16>
    %c0_2 = arith.constant 0 : index
    %c0_3 = arith.constant 0 : index
    %c0_4 = arith.constant 0 : index
    %2 = vector.load %arg2[%c0_2, %c0_3, %c0_4] : memref<1x256x128xbf16, #tpu.memory_space<vmem>>, vector<1x256x128xbf16>
    %3 = vector.shape_cast %2 : vector<1x256x128xbf16> to vector<256x128xbf16>
    %cst = arith.constant dense<0.000000e+00> : vector<16x128xf32>
    %4 = tpu.matmul %1, %3, %cst {dimension_numbers = #tpu.dot_dimension_numbers<[1], [0], [0], [1], [0, 0, 1, 1], [], []>} : vector<16x256xbf16>, vector<256x128xbf16>, vector<16x128xf32> -> vector<16x128xf32>
    %c0_5 = arith.constant 0 : index
    %c0_6 = arith.constant 0 : index
    %c0_7 = arith.constant 0 : index
    %5 = vector.load %arg4[%c0_5, %c0_6, %c0_7] : memref<1x16x128xf32, #tpu.memory_space<vmem>>, vector<1x16x128xf32>
    %6 = vector.shape_cast %5 : vector<1x16x128xf32> to vector<16x128xf32>
    %7 = vector.shape_cast %4 : vector<16x128xf32> to vector<1x16x128xf32>
    tpu.vector_store %arg4[%c0_5, %c0_6, %c0_7], %7 {strides = array<i32>} : memref<1x16x128xf32, #tpu.memory_space<vmem>>, vector<1x16x128xf32>,
    %cst_8 = arith.constant dense<0.000000e+00> : vector<16xf32>
    %8 = vector.multi_reduction <add>, %4, %cst_8 [1] : vector<16x128xf32> to vector<16xf32>
    %9 = vector.shape_cast %8 : vector<16xf32> to vector<16x1xf32>
    %c0_9 = arith.constant 0 : index
    %c0_10 = arith.constant 0 : index
    %c0_11 = arith.constant 0 : index
    %c0_12 = arith.constant 0 : index
    %10 = vector.load %arg5[%c0_9, %c0_10, %c0_11, %c0_12] : memref<1x1x16x2xf32, #tpu.memory_space<vmem>>, vector<1x1x16x1xf32>
    %11 = vector.shape_cast %10 : vector<1x1x16x1xf32> to vector<16x1xf32>
    %12 = vector.shape_cast %9 : vector<16x1xf32> to vector<1x1x16x1xf32>
    tpu.vector_store %arg5[%c0_9, %c0_10, %c0_11, %c0_12], %12 {strides = array<i32>} : memref<1x1x16x2xf32, #tpu.memory_space<vmem>>, vector<1x1x16x1xf32>,
    %13 = arith.mulf %4, %4 : vector<16x128xf32>
    %cst_13 = arith.constant dense<0.000000e+00> : vector<16xf32>
    %14 = vector.multi_reduction <add>, %13, %cst_13 [1] : vector<16x128xf32> to vector<16xf32>
    %15 = vector.shape_cast %14 : vector<16xf32> to vector<16x1xf32>
    %c0_14 = arith.constant 0 : index
    %c0_15 = arith.constant 0 : index
    %c0_16 = arith.constant 0 : index
    %c1 = arith.constant 1 : index
    %16 = vector.load %arg5[%c0_14, %c0_15, %c0_16, %c1] : memref<1x1x16x2xf32, #tpu.memory_space<vmem>>, vector<1x1x16x1xf32>
    %17 = vector.shape_cast %16 : vector<1x1x16x1xf32> to vector<16x1xf32>
    %18 = vector.shape_cast %15 : vector<16x1xf32> to vector<1x1x16x1xf32>
    tpu.vector_store %arg5[%c0_14, %c0_15, %c0_16, %c1], %18 {strides = array<i32>} : memref<1x1x16x2xf32, #tpu.memory_space<vmem>>, vector<1x1x16x1xf32>,
    return
  }
  func.func @transform_0(%arg0: i32, %arg1: i32) -> (i32, i32, i32) {
    %c0_i32 = arith.constant 0 : i32
    %c0_i32_0 = arith.constant 0 : i32
    return %arg0, %c0_i32, %arg1 : i32, i32, i32
  }
  func.func @transform_1(%arg0: i32, %arg1: i32) -> (i32, i32, i32) {
    %c0_i32 = arith.constant 0 : i32
    %c0_i32_0 = arith.constant 0 : i32
    %c0_i32_1 = arith.constant 0 : i32
    return %arg0, %c0_i32, %c0_i32_0 : i32, i32, i32
  }
  func.func @transform_2(%arg0: i32, %arg1: i32) -> (i32, i32, i32) {
    %c0_i32 = arith.constant 0 : i32
    %c0_i32_0 = arith.constant 0 : i32
    return %arg0, %c0_i32, %arg1 : i32, i32, i32
  }
  func.func @transform_3(%arg0: i32, %arg1: i32) -> (i32, i32, i32, i32) {
    %c0_i32 = arith.constant 0 : i32
    %c0_i32_0 = arith.constant 0 : i32
    %c0_i32_1 = arith.constant 0 : i32
    return %arg0, %arg1, %c0_i32, %c0_i32_0 : i32, i32, i32, i32
  }
}

module attributes {stable_mosaic.version = 11 : i64} {
  func.func @_affine_lrelu_kernel(%arg0: i32, %arg1: i32, %arg2: memref<1x16x128xf32, #tpu.memory_space<vmem>>, %arg3: memref<16x1xf32, #tpu.memory_space<vmem>>, %arg4: memref<16x1xf32, #tpu.memory_space<vmem>>, %arg5: memref<1x16x128xf32, #tpu.memory_space<vmem>>) attributes {dimension_semantics = [#tpu.dimension_semantics<parallel>, #tpu.dimension_semantics<parallel>], iteration_bounds = array<i64: 4, 1>, scalar_prefetch = 0 : i64, scratch_operands = 0 : i64, tpu.core_type = #tpu.core_type<tc>, window_params = [{transform_indices = @transform_0, window_bounds = array<i64: 1, 16, 128>}, {pipeline_mode = #tpu.pipeline_mode<synchronous>, transform_indices = @transform_1, window_bounds = array<i64: 16, 1>}, {pipeline_mode = #tpu.pipeline_mode<synchronous>, transform_indices = @transform_2, window_bounds = array<i64: 16, 1>}, {transform_indices = @transform_3, window_bounds = array<i64: 1, 16, 128>}]} {
    %c0 = arith.constant 0 : index
    %c0_0 = arith.constant 0 : index
    %c0_1 = arith.constant 0 : index
    %0 = vector.load %arg2[%c0, %c0_0, %c0_1] : memref<1x16x128xf32, #tpu.memory_space<vmem>>, vector<1x16x128xf32>
    %1 = vector.shape_cast %0 : vector<1x16x128xf32> to vector<16x128xf32>
    %c0_2 = arith.constant 0 : index
    %c0_3 = arith.constant 0 : index
    %2 = vector.load %arg3[%c0_2, %c0_3] : memref<16x1xf32, #tpu.memory_space<vmem>>, vector<16x1xf32>
    %3 = vector.broadcast %2 : vector<16x1xf32> to vector<16x128xf32>
    %4 = arith.mulf %1, %3 : vector<16x128xf32>
    %c0_4 = arith.constant 0 : index
    %c0_5 = arith.constant 0 : index
    %5 = vector.load %arg4[%c0_4, %c0_5] : memref<16x1xf32, #tpu.memory_space<vmem>>, vector<16x1xf32>
    %6 = vector.broadcast %5 : vector<16x1xf32> to vector<16x128xf32>
    %7 = arith.addf %4, %6 : vector<16x128xf32>
    %cst = arith.constant 0.000000e+00 : f32
    %8 = vector.broadcast %cst : f32 to vector<16x128xf32>
    %9 = arith.cmpf oge, %7, %8 : vector<16x128xf32>
    %cst_6 = arith.constant 2.000000e-01 : f32
    %10 = vector.broadcast %cst_6 : f32 to vector<16x128xf32>
    %11 = arith.mulf %10, %7 : vector<16x128xf32>
    %12 = arith.select %9, %7, %11 : vector<16x128xi1>, vector<16x128xf32>
    %c0_7 = arith.constant 0 : index
    %c0_8 = arith.constant 0 : index
    %c0_9 = arith.constant 0 : index
    %13 = vector.load %arg5[%c0_7, %c0_8, %c0_9] : memref<1x16x128xf32, #tpu.memory_space<vmem>>, vector<1x16x128xf32>
    %14 = vector.shape_cast %13 : vector<1x16x128xf32> to vector<16x128xf32>
    %15 = vector.shape_cast %12 : vector<16x128xf32> to vector<1x16x128xf32>
    tpu.vector_store %arg5[%c0_7, %c0_8, %c0_9], %15 {strides = array<i32>} : memref<1x16x128xf32, #tpu.memory_space<vmem>>, vector<1x16x128xf32>,
    return
  }
  func.func @transform_0(%arg0: i32, %arg1: i32) -> (i32, i32, i32) {
    %c0_i32 = arith.constant 0 : i32
    %c0_i32_0 = arith.constant 0 : i32
    return %arg0, %c0_i32, %arg1 : i32, i32, i32
  }
  func.func @transform_1(%arg0: i32, %arg1: i32) -> (i32, i32) {
    %c0_i32 = arith.constant 0 : i32
    %c0_i32_0 = arith.constant 0 : i32
    %c0_i32_1 = arith.constant 0 : i32
    return %c0_i32, %c0_i32_0 : i32, i32
  }
  func.func @transform_2(%arg0: i32, %arg1: i32) -> (i32, i32) {
    %c0_i32 = arith.constant 0 : i32
    %c0_i32_0 = arith.constant 0 : i32
    %c0_i32_1 = arith.constant 0 : i32
    return %c0_i32, %c0_i32_0 : i32, i32
  }
  func.func @transform_3(%arg0: i32, %arg1: i32) -> (i32, i32, i32) {
    %c0_i32 = arith.constant 0 : i32
    %c0_i32_0 = arith.constant 0 : i32
    return %arg0, %c0_i32, %arg1 : i32, i32, i32
  }
}

module attributes {stable_mosaic.version = 11 : i64} {
  func.func @_conv_stats_kernel(%arg0: i32, %arg1: i32, %arg2: memref<1x128x512xbf16, #tpu.memory_space<vmem>>, %arg3: memref<1x8x128xbf16, #tpu.memory_space<vmem>>, %arg4: memref<1x8x512xf32, #tpu.memory_space<vmem>>, %arg5: memref<1x1x8x2xf32, #tpu.memory_space<vmem>>) attributes {dimension_semantics = [#tpu.dimension_semantics<parallel>, #tpu.dimension_semantics<parallel>], iteration_bounds = array<i64: 4, 1>, scalar_prefetch = 0 : i64, scratch_operands = 0 : i64, tpu.core_type = #tpu.core_type<tc>, window_params = [{transform_indices = @transform_0, window_bounds = array<i64: 1, 128, 512>}, {transform_indices = @transform_1, window_bounds = array<i64: 1, 8, 128>}, {transform_indices = @transform_2, window_bounds = array<i64: 1, 8, 512>}, {transform_indices = @transform_3, window_bounds = array<i64: 1, 1, 8, 2>}]} {
    %c0 = arith.constant 0 : index
    %c0_0 = arith.constant 0 : index
    %c0_1 = arith.constant 0 : index
    %0 = vector.load %arg3[%c0, %c0_0, %c0_1] : memref<1x8x128xbf16, #tpu.memory_space<vmem>>, vector<1x8x128xbf16>
    %1 = vector.shape_cast %0 : vector<1x8x128xbf16> to vector<8x128xbf16>
    %c0_2 = arith.constant 0 : index
    %c0_3 = arith.constant 0 : index
    %c0_4 = arith.constant 0 : index
    %2 = vector.load %arg2[%c0_2, %c0_3, %c0_4] : memref<1x128x512xbf16, #tpu.memory_space<vmem>>, vector<1x128x512xbf16>
    %3 = vector.shape_cast %2 : vector<1x128x512xbf16> to vector<128x512xbf16>
    %cst = arith.constant dense<0.000000e+00> : vector<8x512xf32>
    %4 = tpu.matmul %1, %3, %cst {dimension_numbers = #tpu.dot_dimension_numbers<[1], [0], [0], [1], [0, 0, 1, 1], [], []>} : vector<8x128xbf16>, vector<128x512xbf16>, vector<8x512xf32> -> vector<8x512xf32>
    %c0_5 = arith.constant 0 : index
    %c0_6 = arith.constant 0 : index
    %c0_7 = arith.constant 0 : index
    %5 = vector.load %arg4[%c0_5, %c0_6, %c0_7] : memref<1x8x512xf32, #tpu.memory_space<vmem>>, vector<1x8x512xf32>
    %6 = vector.shape_cast %5 : vector<1x8x512xf32> to vector<8x512xf32>
    %7 = vector.shape_cast %4 : vector<8x512xf32> to vector<1x8x512xf32>
    tpu.vector_store %arg4[%c0_5, %c0_6, %c0_7], %7 {strides = array<i32>} : memref<1x8x512xf32, #tpu.memory_space<vmem>>, vector<1x8x512xf32>,
    %cst_8 = arith.constant dense<0.000000e+00> : vector<8xf32>
    %8 = vector.multi_reduction <add>, %4, %cst_8 [1] : vector<8x512xf32> to vector<8xf32>
    %9 = vector.shape_cast %8 : vector<8xf32> to vector<8x1xf32>
    %c0_9 = arith.constant 0 : index
    %c0_10 = arith.constant 0 : index
    %c0_11 = arith.constant 0 : index
    %c0_12 = arith.constant 0 : index
    %10 = vector.load %arg5[%c0_9, %c0_10, %c0_11, %c0_12] : memref<1x1x8x2xf32, #tpu.memory_space<vmem>>, vector<1x1x8x1xf32>
    %11 = vector.shape_cast %10 : vector<1x1x8x1xf32> to vector<8x1xf32>
    %12 = vector.shape_cast %9 : vector<8x1xf32> to vector<1x1x8x1xf32>
    tpu.vector_store %arg5[%c0_9, %c0_10, %c0_11, %c0_12], %12 {strides = array<i32>} : memref<1x1x8x2xf32, #tpu.memory_space<vmem>>, vector<1x1x8x1xf32>,
    %13 = arith.mulf %4, %4 : vector<8x512xf32>
    %cst_13 = arith.constant dense<0.000000e+00> : vector<8xf32>
    %14 = vector.multi_reduction <add>, %13, %cst_13 [1] : vector<8x512xf32> to vector<8xf32>
    %15 = vector.shape_cast %14 : vector<8xf32> to vector<8x1xf32>
    %c0_14 = arith.constant 0 : index
    %c0_15 = arith.constant 0 : index
    %c0_16 = arith.constant 0 : index
    %c1 = arith.constant 1 : index
    %16 = vector.load %arg5[%c0_14, %c0_15, %c0_16, %c1] : memref<1x1x8x2xf32, #tpu.memory_space<vmem>>, vector<1x1x8x1xf32>
    %17 = vector.shape_cast %16 : vector<1x1x8x1xf32> to vector<8x1xf32>
    %18 = vector.shape_cast %15 : vector<8x1xf32> to vector<1x1x8x1xf32>
    tpu.vector_store %arg5[%c0_14, %c0_15, %c0_16, %c1], %18 {strides = array<i32>} : memref<1x1x8x2xf32, #tpu.memory_space<vmem>>, vector<1x1x8x1xf32>,
    return
  }
  func.func @transform_0(%arg0: i32, %arg1: i32) -> (i32, i32, i32) {
    %c0_i32 = arith.constant 0 : i32
    %c0_i32_0 = arith.constant 0 : i32
    return %arg0, %c0_i32, %arg1 : i32, i32, i32
  }
  func.func @transform_1(%arg0: i32, %arg1: i32) -> (i32, i32, i32) {
    %c0_i32 = arith.constant 0 : i32
    %c0_i32_0 = arith.constant 0 : i32
    %c0_i32_1 = arith.constant 0 : i32
    return %arg0, %c0_i32, %c0_i32_0 : i32, i32, i32
  }
  func.func @transform_2(%arg0: i32, %arg1: i32) -> (i32, i32, i32) {
    %c0_i32 = arith.constant 0 : i32
    %c0_i32_0 = arith.constant 0 : i32
    return %arg0, %c0_i32, %arg1 : i32, i32, i32
  }
  func.func @transform_3(%arg0: i32, %arg1: i32) -> (i32, i32, i32, i32) {
    %c0_i32 = arith.constant 0 : i32
    %c0_i32_0 = arith.constant 0 : i32
    %c0_i32_1 = arith.constant 0 : i32
    return %arg0, %arg1, %c0_i32, %c0_i32_0 : i32, i32, i32, i32
  }
}

module attributes {stable_mosaic.version = 11 : i64} {
  func.func @_affine_lrelu_kernel(%arg0: i32, %arg1: i32, %arg2: memref<1x8x512xf32, #tpu.memory_space<vmem>>, %arg3: memref<8x1xf32, #tpu.memory_space<vmem>>, %arg4: memref<8x1xf32, #tpu.memory_space<vmem>>, %arg5: memref<1x8x512xf32, #tpu.memory_space<vmem>>) attributes {dimension_semantics = [#tpu.dimension_semantics<parallel>, #tpu.dimension_semantics<parallel>], iteration_bounds = array<i64: 4, 1>, scalar_prefetch = 0 : i64, scratch_operands = 0 : i64, tpu.core_type = #tpu.core_type<tc>, window_params = [{transform_indices = @transform_0, window_bounds = array<i64: 1, 8, 512>}, {pipeline_mode = #tpu.pipeline_mode<synchronous>, transform_indices = @transform_1, window_bounds = array<i64: 8, 1>}, {pipeline_mode = #tpu.pipeline_mode<synchronous>, transform_indices = @transform_2, window_bounds = array<i64: 8, 1>}, {transform_indices = @transform_3, window_bounds = array<i64: 1, 8, 512>}]} {
    %c0 = arith.constant 0 : index
    %c0_0 = arith.constant 0 : index
    %c0_1 = arith.constant 0 : index
    %0 = vector.load %arg2[%c0, %c0_0, %c0_1] : memref<1x8x512xf32, #tpu.memory_space<vmem>>, vector<1x8x512xf32>
    %1 = vector.shape_cast %0 : vector<1x8x512xf32> to vector<8x512xf32>
    %c0_2 = arith.constant 0 : index
    %c0_3 = arith.constant 0 : index
    %2 = vector.load %arg3[%c0_2, %c0_3] : memref<8x1xf32, #tpu.memory_space<vmem>>, vector<8x1xf32>
    %3 = vector.broadcast %2 : vector<8x1xf32> to vector<8x512xf32>
    %4 = arith.mulf %1, %3 : vector<8x512xf32>
    %c0_4 = arith.constant 0 : index
    %c0_5 = arith.constant 0 : index
    %5 = vector.load %arg4[%c0_4, %c0_5] : memref<8x1xf32, #tpu.memory_space<vmem>>, vector<8x1xf32>
    %6 = vector.broadcast %5 : vector<8x1xf32> to vector<8x512xf32>
    %7 = arith.addf %4, %6 : vector<8x512xf32>
    %cst = arith.constant 0.000000e+00 : f32
    %8 = vector.broadcast %cst : f32 to vector<8x512xf32>
    %9 = arith.cmpf oge, %7, %8 : vector<8x512xf32>
    %cst_6 = arith.constant 2.000000e-01 : f32
    %10 = vector.broadcast %cst_6 : f32 to vector<8x512xf32>
    %11 = arith.mulf %10, %7 : vector<8x512xf32>
    %12 = arith.select %9, %7, %11 : vector<8x512xi1>, vector<8x512xf32>
    %c0_7 = arith.constant 0 : index
    %c0_8 = arith.constant 0 : index
    %c0_9 = arith.constant 0 : index
    %13 = vector.load %arg5[%c0_7, %c0_8, %c0_9] : memref<1x8x512xf32, #tpu.memory_space<vmem>>, vector<1x8x512xf32>
    %14 = vector.shape_cast %13 : vector<1x8x512xf32> to vector<8x512xf32>
    %15 = vector.shape_cast %12 : vector<8x512xf32> to vector<1x8x512xf32>
    tpu.vector_store %arg5[%c0_7, %c0_8, %c0_9], %15 {strides = array<i32>} : memref<1x8x512xf32, #tpu.memory_space<vmem>>, vector<1x8x512xf32>,
    return
  }
  func.func @transform_0(%arg0: i32, %arg1: i32) -> (i32, i32, i32) {
    %c0_i32 = arith.constant 0 : i32
    %c0_i32_0 = arith.constant 0 : i32
    return %arg0, %c0_i32, %arg1 : i32, i32, i32
  }
  func.func @transform_1(%arg0: i32, %arg1: i32) -> (i32, i32) {
    %c0_i32 = arith.constant 0 : i32
    %c0_i32_0 = arith.constant 0 : i32
    %c0_i32_1 = arith.constant 0 : i32
    return %c0_i32, %c0_i32_0 : i32, i32
  }
  func.func @transform_2(%arg0: i32, %arg1: i32) -> (i32, i32) {
    %c0_i32 = arith.constant 0 : i32
    %c0_i32_0 = arith.constant 0 : i32
    %c0_i32_1 = arith.constant 0 : i32
    return %c0_i32, %c0_i32_0 : i32, i32
  }
  func.func @transform_3(%arg0: i32, %arg1: i32) -> (i32, i32, i32) {
    %c0_i32 = arith.constant 0 : i32
    %c0_i32_0 = arith.constant 0 : i32
    return %arg0, %c0_i32, %arg1 : i32, i32, i32
  }
}

module attributes {stable_mosaic.version = 11 : i64} {
  func.func @_conv_bias_sigmoid_kernel(%arg0: i32, %arg1: i32, %arg2: memref<1x64x2048xbf16, #tpu.memory_space<vmem>>, %arg3: memref<1x1x64xbf16, #tpu.memory_space<vmem>>, %arg4: memref<1x1xf32, #tpu.memory_space<vmem>>, %arg5: memref<1x1x2048xf32, #tpu.memory_space<vmem>>) attributes {dimension_semantics = [#tpu.dimension_semantics<parallel>, #tpu.dimension_semantics<parallel>], iteration_bounds = array<i64: 4, 1>, scalar_prefetch = 0 : i64, scratch_operands = 0 : i64, tpu.core_type = #tpu.core_type<tc>, window_params = [{transform_indices = @transform_0, window_bounds = array<i64: 1, 64, 2048>}, {transform_indices = @transform_1, window_bounds = array<i64: 1, 1, 64>}, {pipeline_mode = #tpu.pipeline_mode<synchronous>, transform_indices = @transform_2, window_bounds = array<i64: 1, 1>}, {transform_indices = @transform_3, window_bounds = array<i64: 1, 1, 2048>}]} {
    %c0 = arith.constant 0 : index
    %c0_0 = arith.constant 0 : index
    %c0_1 = arith.constant 0 : index
    %0 = vector.load %arg3[%c0, %c0_0, %c0_1] : memref<1x1x64xbf16, #tpu.memory_space<vmem>>, vector<1x1x64xbf16>
    %1 = vector.shape_cast %0 : vector<1x1x64xbf16> to vector<1x64xbf16>
    %c0_2 = arith.constant 0 : index
    %c0_3 = arith.constant 0 : index
    %c0_4 = arith.constant 0 : index
    %2 = vector.load %arg2[%c0_2, %c0_3, %c0_4] : memref<1x64x2048xbf16, #tpu.memory_space<vmem>>, vector<1x64x2048xbf16>
    %3 = vector.shape_cast %2 : vector<1x64x2048xbf16> to vector<64x2048xbf16>
    %cst = arith.constant dense<0.000000e+00> : vector<1x2048xf32>
    %4 = tpu.matmul %1, %3, %cst {dimension_numbers = #tpu.dot_dimension_numbers<[1], [0], [0], [1], [0, 0, 1, 1], [], []>} : vector<1x64xbf16>, vector<64x2048xbf16>, vector<1x2048xf32> -> vector<1x2048xf32>
    %c0_5 = arith.constant 0 : index
    %c0_6 = arith.constant 0 : index
    %5 = vector.load %arg4[%c0_5, %c0_6] : memref<1x1xf32, #tpu.memory_space<vmem>>, vector<1x1xf32>
    %6 = vector.broadcast %5 : vector<1x1xf32> to vector<1x2048xf32>
    %7 = arith.addf %4, %6 : vector<1x2048xf32>
    %8 = arith.negf %7 : vector<1x2048xf32>
    %9 = math.exp %8 : vector<1x2048xf32>
    %cst_7 = arith.constant 1.000000e+00 : f32
    %10 = vector.broadcast %cst_7 : f32 to vector<1x2048xf32>
    %11 = arith.addf %10, %9 : vector<1x2048xf32>
    %12 = arith.divf %10, %11 : vector<1x2048xf32>
    %c0_8 = arith.constant 0 : index
    %c0_9 = arith.constant 0 : index
    %c0_10 = arith.constant 0 : index
    %13 = vector.load %arg5[%c0_8, %c0_9, %c0_10] : memref<1x1x2048xf32, #tpu.memory_space<vmem>>, vector<1x1x2048xf32>
    %14 = vector.shape_cast %13 : vector<1x1x2048xf32> to vector<1x2048xf32>
    %15 = vector.shape_cast %12 : vector<1x2048xf32> to vector<1x1x2048xf32>
    tpu.vector_store %arg5[%c0_8, %c0_9, %c0_10], %15 {strides = array<i32>} : memref<1x1x2048xf32, #tpu.memory_space<vmem>>, vector<1x1x2048xf32>,
    return
  }
  func.func @transform_0(%arg0: i32, %arg1: i32) -> (i32, i32, i32) {
    %c0_i32 = arith.constant 0 : i32
    %c0_i32_0 = arith.constant 0 : i32
    return %arg0, %c0_i32, %arg1 : i32, i32, i32
  }
  func.func @transform_1(%arg0: i32, %arg1: i32) -> (i32, i32, i32) {
    %c0_i32 = arith.constant 0 : i32
    %c0_i32_0 = arith.constant 0 : i32
    %c0_i32_1 = arith.constant 0 : i32
    return %arg0, %c0_i32, %c0_i32_0 : i32, i32, i32
  }
  func.func @transform_2(%arg0: i32, %arg1: i32) -> (i32, i32) {
    %c0_i32 = arith.constant 0 : i32
    %c0_i32_0 = arith.constant 0 : i32
    %c0_i32_1 = arith.constant 0 : i32
    return %c0_i32, %c0_i32_0 : i32, i32
  }
  func.func @transform_3(%arg0: i32, %arg1: i32) -> (i32, i32, i32) {
    %c0_i32 = arith.constant 0 : i32
    %c0_i32_0 = arith.constant 0 : i32
    return %arg0, %c0_i32, %arg1 : i32, i32, i32
  }
}

</mosaic_0001>

<bundles_post_ra>
// kernel: decoder_forward.9
= control target key start
LH: loop header
LB: loop body
LE: loop exit
PB: predicated region body
PF: predicated region fallthrough
CT: control target
= control target key end

     0   :  { %7 = vsyncpa [#allocation3], 0  ;;  %s391_s9 = smov [#allocation2]   ;;  %s436_s0 = inlined_call_operand.vmem [shape: bf16[2,32], index: 0, kind: input, shape index: {}]   ;;  %s437_s1 = inlined_call_operand.hbm [shape: bf16[32,1024], index: 1, kind: input, shape index: {}]   ;;  %s438_s2 = inlined_call_operand.vmem [shape: f32[2,1024], index: 2, kind: output, shape index: {}]  }
   0x1   :  { %s15_s10 = sshll.u32 %s391_s9, 4  ;;  %s367_s13 = scalar_lea.hbm %s437_s1, 2048  ;;  %s16_s10 = int_to_ptr.vmem [resolvable:$true] %s15_s10 }
   0x2   :  { %p368_p0 = scmp.ne.s32.totalorder %s437_s1, %s367_s13  ;;  %p371_p1 = scmp.lt.u32.totalorder %s367_s13, %s437_s1 }
   0x4   :  { %p373_p2 = pnand %p371_p1, %p368_p0 }
   0x6   :  { %376 = shalt.err (!%p373_p2)
}
   0x7   :  { %s377_s18 = scalar_lea.vmem %s16_s10, 2048  ;;  %p382_p4 = scmp.lt.s32.totalorder %s16_s10, %s16_s10 }
   0x8   :  { %p378_p3 = scmp.ne.s32.totalorder %s16_s10, %s377_s18  ;;  %p383_p5 = scmp.lt.s32.totalorder %s377_s18, %s377_s18 }
   0xa   :  { %p384_p6 = por %p383_p5, %p382_p4 }
   0xc   :  { %p385_p7 = pnand %p384_p6, %p378_p3 }
   0xe   :  { %388 = shalt.err (!%p385_p7)
}
   0xf   :  { %s392_s19 = smov 512   ;;  %s393_s20 = smov 32  }
  0x10   :  { %21 = dma.hbm_to_vmem [thread:$0]  %s437_s1, 2048, %s16_s10, [#allocation3], %s392_s19, %s392_s19, %s393_s20  }
  0x11   :  { %389 = dma.done.wait [#allocation3], 2048  }
  0x12   :  { %390 = vsyncadd [#allocation3], 4294965248  ;;  %v394_v0 = vmov 0   ;;  %v27_v1 = vld [vmem:[#allocation2] sm:$0xff]  ;;  %v28_v3 = vld [vmem:[#allocation2 + $0x8] sm:$0xff]  ;;  %vm123_vm0 = vcmask 261120   ;;  %v304_v36 = vlaneseq }
  0x13   :  { %159 = vmatprep.mubr.bf16.mxu0 %v394_v0  ;;  %200 = vmatprep.mubr.bf16.mxu1 %v394_v0  ;;  %v31_v2 = vld [vmem:[#allocation2 + $0x20] sm:$0xff]  ;;  %v32_v5 = vld [vmem:[#allocation2 + $0x28] sm:$0xff]  ;;  %v29_v15 = vld [vmem:[#allocation2 + $0x10] sm:$0xff]  ;;  %v395_v34 = vmov 1983009808  }
  0x14   :  { %v343_v4 = vcombine.high %v27_v1, %v31_v2  ;;  %v342_v6 = vcombine.low %v27_v1, %v31_v2  ;;  %v35_v7 = vld [vmem:[#allocation2 + $0x40] sm:$0xff]  ;;  %v345_v9 = vcombine.high %v28_v3, %v32_v5  ;;  %v344_v10 = vcombine.low %v28_v3, %v32_v5  ;;  %v36_v12 = vld [vmem:[#allocation2 + $0x48] sm:$0xff]  ;;  %v33_v16 = vld [vmem:[#allocation2 + $0x30] sm:$0xff] }
  0x15   :  { %v39_v8 = vld [vmem:[#allocation2 + $0x60] sm:$0xff]  ;;  %v40_v13 = vld [vmem:[#allocation2 + $0x68] sm:$0xff]  ;;  %v30_v17 = vld [vmem:[#allocation2 + $0x18] sm:$0xff]  ;;  %v347_v21 = vcombine.high %v29_v15, %v33_v16  ;;  %v346_v28 = vcombine.low %v29_v15, %v33_v16  ;;  %v302_v35 = vunpack.c.l.s4 %v395_v34  ;;  %v305_v38 = vshrl.u32 %v304_v36, 7 }
  0x16   :  { %v351_v11 = vcombine.high %v35_v7, %v39_v8  ;;  %127 = vmatprep.subr.bf16.mxu0 %v343_v4  ;;  %v353_v14 = vcombine.high %v36_v12, %v40_v13  ;;  %168 = vmatprep.subr.bf16.mxu1 %v345_v9  ;;  %v350_v18 = vcombine.low %v35_v7, %v39_v8  ;;  %v34_v19 = vld [vmem:[#allocation2 + $0x38] sm:$0xff]  ;;  %v37_v23 = vld [vmem:[#allocation2 + $0x50] sm:$0xff]  ;;  %v26_v27 = vld [vmem:[%s436_s0] sm:$0x1] }
  0x17   :  { %128 = vmatpush1.bf16.msra.mxu0 %v342_v6  ;;  %169 = vmatpush1.bf16.msra.mxu1 %v344_v10  ;;  %v352_v20 = vcombine.low %v36_v12, %v40_v13  ;;  %v349_v22 = vcombine.high %v30_v17, %v34_v19  ;;  %v41_v24 = vld [vmem:[#allocation2 + $0x70] sm:$0xff]  ;;  %v38_v25 = vld [vmem:[#allocation2 + $0x58] sm:$0xff]  ;;  %v348_v29 = vcombine.low %v30_v17, %v34_v19  ;;  %v303_v37 = vunpack.c.0.s8 %v302_v35 }
  0x18   :  { %129 = vmatprep.subr.bf16.mxu0 %v351_v11  ;;  %170 = vmatprep.subr.bf16.mxu1 %v353_v14  ;;  %v42_v26 = vld [vmem:[#allocation2 + $0x78] sm:$0xff]  ;;  %v355_v30 = vcombine.high %v37_v23, %v41_v24  ;;  %v354_v32 = vcombine.low %v37_v23, %v41_v24 }
  0x19   :  { %v357_v31 = vcombine.high %v38_v25, %v42_v26  ;;  %v356_v33 = vcombine.low %v38_v25, %v42_v26  ;;  %v306_v40 = vsub.s32 %v303_v37, %v305_v38 }
  0x1b   :  { %130 = vmatpush1.bf16.msra.mxu0 %v350_v18  ;;  %171 = vmatpush1.bf16.msra.mxu1 %v352_v20 }
  0x1c   :  { %209 = vmatprep.subr.bf16.mxu0 %v347_v21  ;;  %250 = vmatprep.subr.bf16.mxu1 %v349_v22 }
  0x1e   :  { %358 = vmatmul.mubr.msk.bf16.vlgmr.msra.gmra.mrb[0].mxu0 %vm123_vm0, %v26_v27  ;;  %359 = vmatmul.mubr.msk.bf16.vlgmr.msra.gmra.mrb[0].mxu1 %vm123_vm0, %v26_v27 }
  0x1f   :  { %210 = vmatpush1.bf16.msra.mxu0 %v346_v28  ;;  %251 = vmatpush1.bf16.msra.mxu1 %v348_v29 }
  0x20   :  { %211 = vmatprep.subr.bf16.mxu0 %v355_v30  ;;  %252 = vmatprep.subr.bf16.mxu1 %v357_v31 }
  0x21   :  { %241 = vmatprep.mubr.bf16.mxu0 %v394_v0  ;;  %282 = vmatprep.mubr.bf16.mxu1 %v394_v0 }
  0x23   :  { %212 = vmatpush1.bf16.msra.mxu0 %v354_v32  ;;  %253 = vmatpush1.bf16.msra.mxu1 %v356_v33 }
  0x26   :  { %360 = vmatmul.mubr.msk.bf16.vlgmr.msra.gmra.mrb[4].mxu0 %vm123_vm0, %v26_v27  ;;  %361 = vmatmul.mubr.msk.bf16.vlgmr.msra.gmra.mrb[4].mxu1 %vm123_vm0, %v26_v27 }
  0xf1   :  { %v161_v39 = vpop.f32.mrb[0].mxu0  ;;  %v202_v41 = vpop.f32.mrb[0].mxu1 }
  0xf2   :  { %v163_v42 = vpop.f32.mrb[1].mxu0  ;;  %v204_v44 = vpop.f32.mrb[1].mxu1 }
  0xf3   :  { %v299_v43 = vcombine.low %v161_v39, %v163_v42  ;;  %v165_v45 = vpop.f32.mrb[2].mxu0  ;;  %v300_v46 = vcombine.low %v202_v41, %v204_v44  ;;  %v206_v47 = vpop.f32.mrb[2].mxu1 }
  0xf4   :  { %v166_v48 = vpop.f32.mrb[3].mxu0  ;;  %v207_v50 = vpop.f32.mrb[3].mxu1 }
  0xf5   :  { %v307_v49 = vrot.slane %v299_v43, %v306_v40  ;;  %v314_v51 = vrot.slane %v300_v46, %v306_v40 }
  0xf7   :  { %v315_v52 = vcombine.low %v307_v49, %v314_v51 }
  0xf9   :  { %v243_v53 = vpop.f32.mrb[4].mxu0  ;;  %335 = vst [vmem:[%s438_s2] sm:$0xff] %v315_v52  ;;  %v284_v54 = vpop.f32.mrb[4].mxu1 }
  0xfa   :  { %v245_v55 = vpop.f32.mrb[5].mxu0  ;;  %v286_v57 = vpop.f32.mrb[5].mxu1 }
  0xfb   :  { %v316_v56 = vcombine.low %v243_v53, %v245_v55  ;;  %v247_v58 = vpop.f32.mrb[6].mxu0  ;;  %v317_v59 = vcombine.low %v284_v54, %v286_v57  ;;  %v288_v60 = vpop.f32.mrb[6].mxu1 }
  0xfc   :  { %v248_v61 = vpop.f32.mrb[7].mxu0  ;;  %v289_v63 = vpop.f32.mrb[7].mxu1 }
  0xfd   :  { %v324_v62 = vrot.slane %v316_v56, %v306_v40  ;;  %v331_v0 = vrot.slane %v317_v59, %v306_v40 }
  0xff   :  { %v332_v1 = vcombine.low %v324_v62, %v331_v0 }
 0x101   :  { %336 = vst [vmem:[%s438_s2 + $0x8] sm:$0xff] %v332_v1 }
 0x102   :  { %341 = vsyncpa [#allocation3], 1 }

// kernel: decoder_forward.10
= control target key start
LH: loop header
LB: loop body
LE: loop exit
PB: predicated region body
PF: predicated region fallthrough
CT: control target
= control target key end

     0   :  { %v18_v0 = vlaneseq  ;;  %v173_v1 = vmov 1983009808   ;;  %s212_s1 = inlined_call_operand.vmem [shape: f32[1,1024], index: 1, kind: input, shape index: {}]   ;;  %s213_s2 = inlined_call_operand.vmem [shape: f32[1,1024], index: 2, kind: input, shape index: {}]   ;;  %s214_s0 = inlined_call_operand.vmem [shape: f32[2,1024], index: 0, kind: input, shape index: {}]   ;;  %s215_s3 = inlined_call_operand.vmem [shape: f32[2,1024], index: 3, kind: output, shape index: {}]  }
   0x1   :  { %v53_v2 = vunpack.c.l.s4 %v173_v1  ;;  %v16_v4 = vld [vmem:[%s212_s1] sm:$0xff]  ;;  %v15_v52 = vld [vmem:[%s214_s0 + $0x8] sm:$0xff] }
   0x2   :  { %v19_v3 = vshrl.u32 %v18_v0, 7  ;;  %v88_v10 = vld [vmem:[%s213_s2] sm:$0xff] }
   0x3   :  { %v54_v5 = vunpack.c.0.s8 %v53_v2  ;;  %v14_v35 = vld [vmem:[%s214_s0] sm:$0xff] }
   0x4   :  { %v20_v6 = vsub.s32 0, %v19_v3  ;;  %v24_v7 = vsub.s32 1, %v19_v3  ;;  %v28_v8 = vsub.s32 2, %v19_v3  ;;  %v32_v9 = vsub.s32 3, %v19_v3 }
   0x5   :  { %v57_v11 = vsub.s32 %v54_v5, %v19_v3  ;;  %v36_v12 = vsub.s32 4, %v19_v3  ;;  %v40_v13 = vsub.s32 5, %v19_v3  ;;  %v44_v14 = vsub.s32 6, %v19_v3 }
   0x6   :  { %v21_v15 = vrot.slane %v16_v4, %v20_v6  ;;  %v25_v16 = vrot.slane %v16_v4, %v24_v7  ;;  %v29_v17 = vrot.slane %v16_v4, %v28_v8  ;;  %v33_v18 = vrot.slane %v16_v4, %v32_v9 }
   0x7   :  { %v93_v19 = vrot.slane %v88_v10, %v20_v6  ;;  %v97_v20 = vrot.slane %v88_v10, %v24_v7  ;;  %v101_v21 = vrot.slane %v88_v10, %v28_v8  ;;  %v105_v22 = vrot.slane %v88_v10, %v32_v9 }
   0x8   :  { %v50_v23 = vcombine.low %v21_v15, %v25_v16  ;;  %v51_v24 = vcombine.low %v29_v17, %v33_v18  ;;  %v37_v25 = vrot.slane %v16_v4, %v36_v12  ;;  %v41_v26 = vrot.slane %v16_v4, %v40_v13 }
   0x9   :  { %v122_v27 = vcombine.low %v93_v19, %v97_v20  ;;  %v123_v28 = vcombine.low %v101_v21, %v105_v22  ;;  %v45_v29 = vrot.slane %v16_v4, %v44_v14  ;;  %v48_v30 = vsub.s32 7, %v19_v3 }
   0xa   :  { %v58_v31 = vrot.slane %v50_v23, %v57_v11  ;;  %v65_v32 = vrot.slane %v51_v24, %v57_v11  ;;  %v67_v33 = vcombine.low %v37_v25, %v41_v26  ;;  %v109_v34 = vrot.slane %v88_v10, %v36_v12 }
   0xb   :  { %v130_v36 = vrot.slane %v122_v27, %v57_v11  ;;  %v137_v37 = vrot.slane %v123_v28, %v57_v11  ;;  %v49_v38 = vrot.slane %v16_v4, %v48_v30  ;;  %v113_v39 = vrot.slane %v88_v10, %v40_v13 }
   0xc   :  { %v66_v40 = vcombine.low %v58_v31, %v65_v32  ;;  %v117_v41 = vrot.slane %v88_v10, %v44_v14  ;;  %v121_v42 = vrot.slane %v88_v10, %v48_v30  ;;  %v75_v45 = vrot.slane %v67_v33, %v57_v11 }
   0xd   :  { %v138_v43 = vcombine.low %v130_v36, %v137_v37  ;;  %v68_v44 = vcombine.low %v45_v29, %v49_v38  ;;  %v139_v46 = vcombine.low %v109_v34, %v113_v39 }
   0xe   :  { %v86_v47 = vmul.f32 %v66_v40, %v14_v35  ;;  %v140_v48 = vcombine.low %v117_v41, %v121_v42 }
   0xf   :  { %v82_v49 = vrot.slane %v68_v44, %v57_v11  ;;  %v147_v50 = vrot.slane %v139_v46, %v57_v11 }
  0x10   :  { %v158_v51 = vadd.f32 %v138_v43, %v86_v47  ;;  %v154_v53 = vrot.slane %v140_v48, %v57_v11 }
  0x11   :  { %v83_v54 = vcombine.low %v75_v45, %v82_v49 }
  0x12   :  { %vm160_vm0 = vcmp.ge.f32.partialorder %v158_v51, 0.0  ;;  %v162_v55 = vmul.f32 0.2, %v158_v51  ;;  %v155_v56 = vcombine.low %v147_v50, %v154_v53 }
  0x13   :  { %v87_v57 = vmul.f32 %v83_v54, %v15_v52 }
  0x14   :  { %v164_v58 = vsel %vm160_vm0, %v158_v51, %v162_v55 }
  0x15   :  { %166 = vst [vmem:[%s215_s3] sm:$0xff] %v164_v58  ;;  %v159_v59 = vadd.f32 %v155_v56, %v87_v57 }
  0x17   :  { %vm161_vm1 = vcmp.ge.f32.partialorder %v159_v59, 0.0  ;;  %v163_v60 = vmul.f32 0.2, %v159_v59 }
  0x19   :  { %v165_v61 = vsel %vm161_vm1, %v159_v59, %v163_v60 }
  0x1a   :  { %167 = vst [vmem:[%s215_s3 + $0x8] sm:$0xff] %v165_v61 }

// kernel: decoder_forward.11
= control target key start
LH: loop header
LB: loop body
LE: loop exit
PB: predicated region body
PF: predicated region fallthrough
CT: control target
= control target key end

     0   :  { %s1066_s12 = smov 0   ;;  %s1068_s13 = smov 0   ;;  %s1166_s0 = inlined_call_operand.vmem [shape: bf16[4,512,32], index: 0, kind: input, shape index: {}]   ;;  %s1167_s1 = inlined_call_operand.vmem [shape: bf16[4,32,512], index: 1, kind: input, shape index: {}]   ;;  %s1168_s2 = inlined_call_operand.vmem [shape: f32[4,32,32], index: 2, kind: output, shape index: {0}]   ;;  %s1169_s3 = inlined_call_operand.vmem [shape: f32[4,1,32,2], index: 3, kind: output, shape index: {1}]  }
   0x1   :  { %s1070_s14 = smov 0  }
   0x2 LB: > { %s26_s15 = sadd.s32 1, %s1040_s13  ;;  %p843_p0 = scmp.ge.s32.totalorder %s1044_s14, 1  ;;  %s1044_s14 = sphi %s1070_s14, %s14_s14   ;;  %s1040_s13 = sphi %s1068_s13, %s1171_s13   ;;  %s1036_s12 = sphi %s1066_s12, %s1170_s12  }
   0x3   : > { %p28_p1 = scmp.ge.s32.totalorder %s26_s15, 4  ;;  %p171_p2 = scmp.lt.s32.totalorder %s1044_s14, 5 }
   0x5   : > { %s1173_s15 = smov (%p28_p1, %s26_s15), 0  ;;  %p172_p3 = pnand %p843_p0, %p171_p2 }
   0x6   : > { %p215_p4 = scmp.lt.s32.totalorder (!%p172_p3), %s1036_s12, 3  ;;  %vm648_vm0 = vcmask (!%p172_p3), 261120   ;;  %vm665_vm1 = vcmask (!%p172_p3), 7168   ;;  %vm686_vm2 = vcmask (!%p172_p3), 15368  }
   0x7   : > { %175 = sbr.rel (%p172_p3) target bundleno = 429 (0x1ad), region = 28 }
   0xe   : > { %s1175_s12 = smov (!%p215_p4, %s1036_s12), 3 }
   0xf   : > { %s894_s16 = sshll.u32 %s1175_s12, 8  ;;  %s895_s20 = sshll.u32 %s1175_s12, 6 }
  0x10   : > { %s1090_s19 = scalar_lea.vmem %s1166_s0, %s894_s16  ;;  %s227_s23 = scalar_lea.vmem %s1167_s1, %s895_s20 }
  0x11   : > { %v978_v0 = vld [vmem:[%s1090_s19 + $0x40] sm:$0xff]   ;;  %v982_v4 = vld [vmem:[%s1090_s19 + $0x48] sm:$0xff]   ;;  %v986_v8 = vld [vmem:[%s1090_s19 + $0x50] sm:$0xff]   ;;  %s896_s24 = sshll.u32 %s1175_s12, 5 }
  0x12   : > { %v979_v1 = vld [vmem:[%s1090_s19 + $0xc0] sm:$0xff]   ;;  %898 = vmatprep.subr.bf16.mxu0 %v978_v0  ;;  %v983_v5 = vld [vmem:[%s1090_s19 + $0xc8] sm:$0xff]   ;;  %v987_v9 = vld [vmem:[%s1090_s19 + $0xd0] sm:$0xff]   ;;  %s1134_s27 = scalar_lea.vmem %s1168_s2, %s896_s24  ;;  %s244_s30 = scalar_lea.vmem %s1169_s3, %s896_s24 }
  0x13   : > { %v980_v2 = vld [vmem:[%s1090_s19] sm:$0xff]   ;;  %926 = vmatprep.subr.bf16.mxu1 %v979_v1  ;;  %v984_v6 = vld [vmem:[%s1090_s19 + $0x8] sm:$0xff]   ;;  %v988_v10 = vld [vmem:[%s1090_s19 + $0x10] sm:$0xff]  }
  0x14   : > { %v981_v3 = vld [vmem:[%s1090_s19 + $0x80] sm:$0xff]   ;;  %899 = vmatpush3.bf16.msra.mxu0 %v980_v2  ;;  %v985_v7 = vld [vmem:[%s1090_s19 + $0x88] sm:$0xff]   ;;  %v989_v11 = vld [vmem:[%s1090_s19 + $0x90] sm:$0xff]  }
  0x15   : > { %927 = vmatpush3.bf16.msra.mxu1 %v981_v3  ;;  %900 = vmatprep.subr.bf16.mxu0 %v982_v4  ;;  %v990_v12 = vld [vmem:[%s1090_s19 + $0x58] sm:$0xff]   ;;  %v994_v16 = vld [vmem:[%s1090_s19 + $0x60] sm:$0xff]   ;;  %v998_v20 = vld [vmem:[%s1090_s19 + $0x68] sm:$0xff]  }
  0x16   : > { %928 = vmatprep.subr.bf16.mxu1 %v983_v5  ;;  %v991_v13 = vld [vmem:[%s1090_s19 + $0xd8] sm:$0xff]   ;;  %v995_v17 = vld [vmem:[%s1090_s19 + $0xe0] sm:$0xff]   ;;  %v999_v21 = vld [vmem:[%s1090_s19 + $0xe8] sm:$0xff]  }
  0x17   : > { %v992_v14 = vld [vmem:[%s1090_s19 + $0x18] sm:$0xff]   ;;  %v996_v18 = vld [vmem:[%s1090_s19 + $0x20] sm:$0xff]   ;;  %v1000_v22 = vld [vmem:[%s1090_s19 + $0x28] sm:$0xff]  }
  0x18   : > { %901 = vmatpush3.bf16.msra.mxu0 %v984_v6  ;;  %v993_v15 = vld [vmem:[%s1090_s19 + $0x98] sm:$0xff]   ;;  %v997_v19 = vld [vmem:[%s1090_s19 + $0xa0] sm:$0xff]   ;;  %v1001_v23 = vld [vmem:[%s1090_s19 + $0xa8] sm:$0xff]  }
  0x19   : > { %929 = vmatpush3.bf16.msra.mxu1 %v985_v7  ;;  %902 = vmatprep.subr.bf16.mxu0 %v986_v8  ;;  %v1002_v24 = vld [vmem:[%s1090_s19 + $0x70] sm:$0xff]   ;;  %v1006_v28 = vld [vmem:[%s1090_s19 + $0x78] sm:$0xff]  }
  0x1a   : > { %930 = vmatprep.subr.bf16.mxu1 %v987_v9  ;;  %v1003_v25 = vld [vmem:[%s1090_s19 + $0xf0] sm:$0xff]   ;;  %v1007_v29 = vld [vmem:[%s1090_s19 + $0xf8] sm:$0xff]  }
  0x1b   : > { %v1004_v26 = vld [vmem:[%s1090_s19 + $0x30] sm:$0xff]   ;;  %v1008_v30 = vld [vmem:[%s1090_s19 + $0x38] sm:$0xff]  }
  0x1c   : > { %903 = vmatpush3.bf16.msra.mxu0 %v988_v10  ;;  %v1005_v27 = vld [vmem:[%s1090_s19 + $0xb0] sm:$0xff]   ;;  %v1009_v31 = vld [vmem:[%s1090_s19 + $0xb8] sm:$0xff]  }
  0x1d   : > { %931 = vmatpush3.bf16.msra.mxu1 %v989_v11  ;;  %904 = vmatprep.subr.bf16.mxu0 %v990_v12  ;;  %v1010_v32 = vld [vmem:[%s227_s23] ss:$16 sps:$4 sm:$0xff]   ;;  %v1012_v33 = vld [vmem:[%s227_s23 + $0x4] ss:$16 sps:$4 sm:$0xff]   ;;  %v1013_v34 = vld [vmem:[%s227_s23 + $0x8] ss:$16 sps:$4 sm:$0xff]  }
  0x1e   : > { %932 = vmatprep.subr.bf16.mxu1 %v991_v13  ;;  %v1015_v35 = vld [vmem:[%s227_s23 + $0xc] ss:$16 sps:$4 sm:$0xff]   ;;  %582 = vmatprep.mubr.bf16.mxu0 %v1012_v33  ;;  %v1016_v36 = vld [vmem:[%s227_s23 + $0x24] ss:$16 sps:$4 sm:$0xff]   ;;  %v1020_v38 = vld [vmem:[%s227_s23 + $0x20] ss:$16 sps:$4 sm:$0xff]  }
  0x1f   : > { %631 = vmatprep.mubr.bf16.mxu1 %v1015_v35  ;;  %v1018_v37 = vld [vmem:[%s227_s23 + $0x2c] ss:$16 sps:$4 sm:$0xff]   ;;  %v1021_v39 = vld [vmem:[%s227_s23 + $0x28] ss:$16 sps:$4 sm:$0xff]  }
  0x20   : > { %905 = vmatpush3.bf16.msra.mxu0 %v992_v14 }
  0x21   : > { %933 = vmatpush3.bf16.msra.mxu1 %v993_v15  ;;  %906 = vmatprep.subr.bf16.mxu0 %v994_v16 }
  0x22   : > { %934 = vmatprep.subr.bf16.mxu1 %v995_v17 }
  0x24   : > { %907 = vmatpush3.bf16.msra.mxu0 %v996_v18 }
  0x25   : > { %935 = vmatpush3.bf16.msra.mxu1 %v997_v19  ;;  %908 = vmatprep.subr.bf16.mxu0 %v998_v20 }
  0x26   : > { %936 = vmatprep.subr.bf16.mxu1 %v999_v21 }
  0x28   : > { %909 = vmatpush3.bf16.msra.mxu0 %v1000_v22 }
  0x29   : > { %937 = vmatpush3.bf16.msra.mxu1 %v1001_v23  ;;  %910 = vmatprep.subr.bf16.mxu0 %v1002_v24 }
  0x2a   : > { %938 = vmatprep.subr.bf16.mxu1 %v1003_v25 }
  0x2c   : > { %911 = vmatpush3.bf16.msra.mxu0 %v1004_v26 }
  0x2d   : > { %939 = vmatpush3.bf16.msra.mxu1 %v1005_v27  ;;  %912 = vmatprep.subr.bf16.mxu0 %v1006_v28 }
  0x2e   : > { %940 = vmatprep.subr.bf16.mxu1 %v1007_v29 }
  0x30   : > { %913 = vmatpush3.bf16.msra.mxu0 %v1008_v30 }
  0x31   : > { %941 = vmatpush3.bf16.msra.mxu1 %v1009_v31 }
  0x33   : > { %583 = vmatmul.mubr.bf16.vlgmr.msra.gmra.mrb[0].mxu0 %v1010_v32 }
  0x34   : > { %632 = vmatmul.mubr.bf16.vlgmr.msra.gmra.mrb[0].mxu1 %v1013_v34  ;;  %590 = vmatprep.mubr.bf16.mxu0 %v1016_v36 }
  0x35   : > { %639 = vmatprep.mubr.bf16.mxu1 %v1018_v37 }
  0x3b   : > { %591 = vmatmul.mubr.bf16.gmra.mrb[4].mxu0 %v1020_v38 }
  0x3c   : > { %640 = vmatmul.mubr.bf16.gmra.mrb[4].mxu1 %v1021_v39 }
 0x106   : > { %v914_v40 = vpop.f32.mrb[0].mxu0 }
 0x107   : > { %v942_v41 = vpop.f32.mrb[0].mxu1  ;;  %v915_v42 = vpop.f32.mrb[1].mxu0 }
 0x108   : > { %v916_v43 = vadd.f32 %v915_v42, %v914_v40  ;;  %v943_v44 = vpop.f32.mrb[1].mxu1  ;;  %v917_v45 = vpop.f32.mrb[2].mxu0 }
 0x109   : > { %v944_v46 = vadd.f32 %v943_v44, %v942_v41  ;;  %v945_v47 = vpop.f32.mrb[2].mxu1  ;;  %v918_v48 = vpop.f32.mrb[3].mxu0 }
 0x10a   : > { %v919_v49 = vadd.f32 %v918_v48, %v917_v45  ;;  %v946_v50 = vpop.f32.mrb[3].mxu1 }
 0x10b   : > { %v634_v51 = vadd.f32 %v944_v46, %v916_v43  ;;  %v947_v52 = vadd.f32 %v946_v50, %v945_v47 }
 0x10d   : > { %649 = vst.msk [vmem:[%s1134_s27] sm:$0xff] %vm648_vm0, %v634_v51  ;;  %v637_v53 = vadd.f32 %v947_v52, %v919_v49  ;;  %v653_v54 = vsel %vm648_vm0, %v634_v51, 0.0  ;;  %v670_v3 = vmul.f32 %v634_v51, %v634_v51 }
 0x10e   : > { %654 = vadd.xlane.f32.xlu0 %v653_v54  ;;  %v920_v55 = vpop.f32.mrb[4].mxu0 }
 0x10f   : > { %650 = vst.msk [vmem:[%s1134_s27 + $0x8] sm:$0xff] %vm648_vm0, %v637_v53  ;;  %v948_v56 = vpop.f32.mrb[4].mxu1  ;;  %v921_v57 = vpop.f32.mrb[5].mxu0  ;;  %v671_v58 = vmul.f32 %v637_v53, %v637_v53  ;;  %v656_v2 = vsel %vm648_vm0, %v637_v53, 0.0  ;;  %v674_v10 = vsel %vm648_vm0, %v670_v3, 0.0 }
 0x110   : > { %v922_v59 = vadd.f32 %v921_v57, %v920_v55  ;;  %v949_v60 = vpop.f32.mrb[5].mxu1  ;;  %v923_v61 = vpop.f32.mrb[6].mxu0 }
 0x111   : > { %v950_v62 = vadd.f32 %v949_v60, %v948_v56  ;;  %v951_v63 = vpop.f32.mrb[6].mxu1  ;;  %v924_v0 = vpop.f32.mrb[7].mxu0  ;;  %v677_v1 = vsel %vm648_vm0, %v671_v58, 0.0 }
 0x112   : > { %v925_v4 = vadd.f32 %v924_v0, %v923_v61  ;;  %v952_v5 = vpop.f32.mrb[7].mxu1  ;;  %678 = vadd.xlane.f32.xlu1 %v677_v1  ;;  %657 = vadd.xlane.f32.xlu0 %v656_v2 }
 0x113   : > { %v642_v6 = vadd.f32 %v950_v62, %v922_v59  ;;  %v953_v7 = vadd.f32 %v952_v5, %v951_v63 }
 0x115   : > { %651 = vst.msk [vmem:[%s1134_s27 + $0x10] sm:$0xff] %vm648_vm0, %v642_v6  ;;  %v645_v8 = vadd.f32 %v953_v7, %v925_v4  ;;  %v659_v9 = vsel %vm648_vm0, %v642_v6, 0.0  ;;  %v672_v11 = vmul.f32 %v642_v6, %v642_v6 }
 0x116   : > { %660 = vadd.xlane.f32.xlu1 %v659_v9  ;;  %675 = vadd.xlane.f32.xlu0 %v674_v10 }
 0x117   : > { %652 = vst.msk [vmem:[%s1134_s27 + $0x18] sm:$0xff] %vm648_vm0, %v645_v8  ;;  %v662_v12 = vsel %vm648_vm0, %v645_v8, 0.0  ;;  %v680_v13 = vsel %vm648_vm0, %v672_v11, 0.0  ;;  %v673_v14 = vmul.f32 %v645_v8, %v645_v8 }
 0x119   : > { %v683_v15 = vsel %vm648_vm0, %v673_v14, 0.0 }
 0x11a   : > { %663 = vadd.xlane.f32.xlu1 %v662_v12  ;;  %681 = vadd.xlane.f32.xlu0 %v680_v13 }
 0x11e   : > { %684 = vadd.xlane.f32.xlu1 %v683_v15 }
 0x19b   : > { %v655_v16 = vpop.xlane.xlu0 %654 }
 0x19c   : > { %666 = vst.msk [vmem:[%s244_s30] sm:$0xff] %vm665_vm1, %v655_v16 }
 0x19f   : > { %v679_v17 = vpop.xlane.xlu1 %678  ;;  %v658_v18 = vpop.xlane.xlu0 %657 }
 0x1a0   : > { %667 = vst.msk [vmem:[%s244_s30 + $0x8] sm:$0xff] %vm665_vm1, %v658_v18 }
 0x1a1   : > { %688 = vst.msk [vmem:[%s244_s30 + $0x8] sm:$0xff] %vm686_vm2, %v679_v17 }
 0x1a3   : > { %v661_v19 = vpop.xlane.xlu1 %660  ;;  %v676_v20 = vpop.xlane.xlu0 %675 }
 0x1a4   : > { %668 = vst.msk [vmem:[%s244_s30 + $0x10] sm:$0xff] %vm665_vm1, %v661_v19 }
 0x1a5   : > { %687 = vst.msk [vmem:[%s244_s30] sm:$0xff] %vm686_vm2, %v676_v20 }
 0x1a7   : > { %v664_v21 = vpop.xlane.xlu1 %663  ;;  %v682_v22 = vpop.xlane.xlu0 %681 }
 0x1a8   : > { %669 = vst.msk [vmem:[%s244_s30 + $0x18] sm:$0xff] %vm665_vm1, %v664_v21 }
 0x1a9   : > { %689 = vst.msk [vmem:[%s244_s30 + $0x10] sm:$0xff] %vm686_vm2, %v682_v22 }
 0x1ab   : > { %v685_v23 = vpop.xlane.xlu1 %684 }
 0x1ac   : > { %690 = vst.msk [vmem:[%s244_s30 + $0x18] sm:$0xff] %vm686_vm2, %v685_v23 }
 0x1ad PF: > { %s14_s14 = sadd.s32 1, %s1044_s14   ;;  %s1170_s12 = smov %s1040_s13 }
 0x1ae   : > { %p11_p5 = scmp.ge.s32.totalorder %s14_s14, 6   ;;  %s1171_s13 = smov %s1173_s15 }
 0x1b0   :  { %13 = sbr.rel (!%p11_p5) target bundleno = 2 (0x2), region = 73 }

// kernel: decoder_forward.12
= control target key start
LH: loop header
LB: loop body
LE: loop exit
PB: predicated region body
PF: predicated region fallthrough
CT: control target
= control target key end

     0   :  { %s447_s12 = smov 0   ;;  %s449_s13 = smov 0   ;;  %s512_s0 = inlined_call_operand.vmem [shape: f32[4,32,32], index: 0, kind: input, shape index: {}]   ;;  %s513_s1 = inlined_call_operand.vmem [shape: f32[32,1], index: 1, kind: input, shape index: {}]   ;;  %s514_s2 = inlined_call_operand.vmem [shape: f32[32,1], index: 2, kind: input, shape index: {}]   ;;  %s515_s3 = inlined_call_operand.vmem [shape: f32[4,32,32], index: 3, kind: output, shape index: {}]  }
   0x1   :  { %s451_s14 = smov 0  }
   0x2 LB: > { %s25_s15 = sadd.s32 1, %s420_s13  ;;  %p366_p0 = scmp.ge.s32.totalorder %s424_s14, 1  ;;  %s424_s14 = sphi %s451_s14, %s13_s14   ;;  %s420_s13 = sphi %s449_s13, %s517_s13   ;;  %s416_s12 = sphi %s447_s12, %s516_s12  }
   0x3   : > { %p27_p1 = scmp.ge.s32.totalorder %s25_s15, 4  ;;  %p156_p2 = scmp.lt.s32.totalorder %s424_s14, 5 }
   0x5   : > { %s519_s15 = smov (%p27_p1, %s25_s15), 0  ;;  %p157_p3 = pnand %p366_p0, %p156_p2 }
   0x6   : > { %v208_v0 = vld [vmem:[%s513_s1 + $0x10] sm:$0xff] (!%p157_p3)  ;;  %v206_v1 = vld [vmem:[%s513_s1] sm:$0xff] (!%p157_p3)  ;;  %v426_v2 = vmov (!%p157_p3), 0   ;;  %v209_v3 = vld [vmem:[%s513_s1 + $0x18] sm:$0xff] (!%p157_p3)  ;;  %p186_p4 = scmp.lt.s32.totalorder (!%p157_p3), %s416_s12, 3  ;;  %vm274_vm0 = vcmask (!%p157_p3), 261120  }
   0x7   : > { %160 = sbr.rel (%p157_p3) target bundleno = 154 (0x9a), region = 32  ;;  %401 = vset.pattern.permute.xlu1 (!%p157_p3), %v426_v2  ;;  %400 = vset.pattern.permute.xlu0 (!%p157_p3), %v426_v2  ;;  %v207_v4 = vld [vmem:[%s513_s1 + $0x8] sm:$0xff] (!%p157_p3)  ;;  %v234_v6 = vld [vmem:[%s514_s2] sm:$0xff] (!%p157_p3)  ;;  %v237_v7 = vld [vmem:[%s514_s2 + $0x18] sm:$0xff] (!%p157_p3) }
   0x8   : > { %222 = vperm.xlu1 (!%p157_p3), %401, %v208_v0   ;;  %212 = vperm.xlu0 (!%p157_p3), %400, %v206_v1   ;;  %v235_v5 = vld [vmem:[%s514_s2 + $0x8] sm:$0xff] (!%p157_p3)  ;;  %v236_v8 = vld [vmem:[%s514_s2 + $0x10] sm:$0xff] (!%p157_p3) }
   0xc   : > { %227 = vperm.xlu1 (!%p157_p3), %401, %v209_v3   ;;  %217 = vperm.xlu0 (!%p157_p3), %400, %v207_v4  }
   0xe   : > { %s521_s12 = smov (!%p186_p4, %s416_s12), 3 }
   0xf   : > { %s373_s5 = sshll.u32 %s521_s12, 5 }
  0x10   : > { %245 = vperm.xlu1 %401, %v235_v5   ;;  %240 = vperm.xlu0 %400, %v234_v6   ;;  %s193_s8 = scalar_lea.vmem %s512_s0, %s373_s5  ;;  %s201_s11 = scalar_lea.vmem %s515_s3, %s373_s5 }
  0x11   : > { %v202_v11 = vld [vmem:[%s193_s8] sm:$0xff]  ;;  %v203_v14 = vld [vmem:[%s193_s8 + $0x8] sm:$0xff]  ;;  %v204_v15 = vld [vmem:[%s193_s8 + $0x10] sm:$0xff] }
  0x12   : > { %v205_v17 = vld [vmem:[%s193_s8 + $0x18] sm:$0xff] }
  0x14   : > { %255 = vperm.xlu1 %401, %v237_v7   ;;  %250 = vperm.xlu0 %400, %v236_v8  }
  0x87   : > { %v223_v9 = vpop.permute.xlu1 %222  ;;  %v213_v10 = vpop.permute.xlu0 %212 }
  0x88   : > { %v230_v16 = vmul.f32 %v213_v10, %v202_v11  ;;  %v232_v23 = vmul.f32 %v223_v9, %v204_v15 }
  0x8b   : > { %v228_v12 = vpop.permute.xlu1 %227  ;;  %v218_v13 = vpop.permute.xlu0 %217 }
  0x8c   : > { %v231_v18 = vmul.f32 %v218_v13, %v203_v14  ;;  %v233_v24 = vmul.f32 %v228_v12, %v205_v17 }
  0x8f   : > { %v246_v19 = vpop.permute.xlu1 %245  ;;  %v241_v20 = vpop.permute.xlu0 %240 }
  0x90   : > { %v259_v21 = vadd.f32 %v246_v19, %v231_v18  ;;  %v258_v22 = vadd.f32 %v241_v20, %v230_v16 }
  0x92   : > { %vm263_vm1 = vcmp.ge.f32.partialorder %v259_v21, 0.0  ;;  %v267_v25 = vmul.f32 0.2, %v259_v21  ;;  %vm262_vm2 = vcmp.ge.f32.partialorder %v258_v22, 0.0  ;;  %v266_v26 = vmul.f32 0.2, %v258_v22 }
  0x93   : > { %v256_v27 = vpop.permute.xlu1 %255  ;;  %v251_v28 = vpop.permute.xlu0 %250 }
  0x94   : > { %v271_v29 = vsel %vm263_vm1, %v259_v21, %v267_v25  ;;  %v270_v30 = vsel %vm262_vm2, %v258_v22, %v266_v26  ;;  %v261_v31 = vadd.f32 %v256_v27, %v233_v24  ;;  %v260_v32 = vadd.f32 %v251_v28, %v232_v23 }
  0x95   : > { %276 = vst.msk [vmem:[%s201_s11 + $0x8] sm:$0xff] %vm274_vm0, %v271_v29  ;;  %275 = vst.msk [vmem:[%s201_s11] sm:$0xff] %vm274_vm0, %v270_v30 }
  0x96   : > { %vm265_vm3 = vcmp.ge.f32.partialorder %v261_v31, 0.0  ;;  %v269_v33 = vmul.f32 0.2, %v261_v31  ;;  %vm264_vm4 = vcmp.ge.f32.partialorder %v260_v32, 0.0  ;;  %v268_v34 = vmul.f32 0.2, %v260_v32 }
  0x98   : > { %v273_v35 = vsel %vm265_vm3, %v261_v31, %v269_v33  ;;  %v272_v36 = vsel %vm264_vm4, %v260_v32, %v268_v34 }
  0x99   : > { %278 = vst.msk [vmem:[%s201_s11 + $0x18] sm:$0xff] %vm274_vm0, %v273_v35  ;;  %277 = vst.msk [vmem:[%s201_s11 + $0x10] sm:$0xff] %vm274_vm0, %v272_v36 }
  0x9a PF: > { %s13_s14 = sadd.s32 1, %s424_s14   ;;  %s516_s12 = smov %s420_s13 }
  0x9b   : > { %p10_p5 = scmp.ge.s32.totalorder %s13_s14, 6   ;;  %s517_s13 = smov %s519_s15 }
  0x9d   :  { %12 = sbr.rel (!%p10_p5) target bundleno = 2 (0x2), region = 62 }

// kernel: decoder_forward.14
= control target key start
LH: loop header
LB: loop body
LE: loop exit
PB: predicated region body
PF: predicated region fallthrough
CT: control target
= control target key end

     0   :  { %s408_s12 = smov 0   ;;  %s410_s13 = smov 0   ;;  %s453_s0 = inlined_call_operand.vmem [shape: f32[4,16,128], index: 0, kind: input, shape index: {}]   ;;  %s454_s1 = inlined_call_operand.vmem [shape: f32[16,1], index: 1, kind: input, shape index: {}]   ;;  %s455_s2 = inlined_call_operand.vmem [shape: f32[16,1], index: 2, kind: input, shape index: {}]   ;;  %s456_s3 = inlined_call_operand.vmem [shape: f32[4,16,128], index: 3, kind: output, shape index: {}]  }
   0x1   :  { %s412_s14 = smov 0  }
   0x2 LB: > { %s25_s15 = sadd.s32 1, %s381_s13  ;;  %p327_p0 = scmp.ge.s32.totalorder %s385_s14, 1  ;;  %s385_s14 = sphi %s412_s14, %s13_s14   ;;  %s381_s13 = sphi %s410_s13, %s458_s13   ;;  %s377_s12 = sphi %s408_s12, %s457_s12  }
   0x3   : > { %p27_p1 = scmp.ge.s32.totalorder %s25_s15, 4  ;;  %p156_p2 = scmp.lt.s32.totalorder %s385_s14, 5 }
   0x5   : > { %s460_s15 = smov (%p27_p1, %s25_s15), 0  ;;  %p157_p3 = pnand %p327_p0, %p156_p2 }
   0x6   : > { %v218_v0 = vld [vmem:[%s455_s2] sm:$0xff] (!%p157_p3)  ;;  %v387_v2 = vmov (!%p157_p3), 0   ;;  %v219_v3 = vld [vmem:[%s455_s2 + $0x8] sm:$0xff] (!%p157_p3)  ;;  %p186_p4 = scmp.lt.s32.totalorder (!%p157_p3), %s377_s12, 3 }
   0x7   : > { %160 = sbr.rel (%p157_p3) target bundleno = 148 (0x94), region = 32  ;;  %v204_v1 = vld [vmem:[%s454_s1] sm:$0xff] (!%p157_p3)  ;;  %362 = vset.pattern.permute.xlu1 (!%p157_p3), %v387_v2  ;;  %361 = vset.pattern.permute.xlu0 (!%p157_p3), %v387_v2  ;;  %v205_v4 = vld [vmem:[%s454_s1 + $0x8] sm:$0xff] (!%p157_p3) }
   0x8   : > { %222 = vperm.xlu1 (!%p157_p3), %362, %v218_v0   ;;  %208 = vperm.xlu0 (!%p157_p3), %361, %v204_v1  }
   0xc   : > { %227 = vperm.xlu1 (!%p157_p3), %362, %v219_v3   ;;  %213 = vperm.xlu0 (!%p157_p3), %361, %v205_v4  }
   0xe   : > { %s462_s12 = smov (!%p186_p4, %s377_s12), 3 }
   0xf   : > { %s334_s24 = sshll.u32 %s462_s12, 4 }
  0x10   : > { %s193_s27 = scalar_lea.vmem %s453_s0, %s334_s24  ;;  %s201_s30 = scalar_lea.vmem %s456_s3, %s334_s24 }
  0x11   : > { %v202_v5 = vld [vmem:[%s193_s27] sm:$0xff]  ;;  %v203_v9 = vld [vmem:[%s193_s27 + $0x8] sm:$0xff] }
  0x87   : > { %v223_v6 = vpop.permute.xlu1 %222  ;;  %v209_v7 = vpop.permute.xlu0 %208 }
  0x88   : > { %v216_v8 = vmul.f32 %v209_v7, %v202_v5 }
  0x8a   : > { %v230_v10 = vadd.f32 %v223_v6, %v216_v8 }
  0x8b   : > { %v214_v11 = vpop.permute.xlu0 %213  ;;  %v228_v14 = vpop.permute.xlu1 %227 }
  0x8c   : > { %vm232_vm0 = vcmp.ge.f32.partialorder %v230_v10, 0.0  ;;  %v234_v12 = vmul.f32 0.2, %v230_v10  ;;  %v217_v13 = vmul.f32 %v214_v11, %v203_v9 }
  0x8e   : > { %v236_v15 = vsel %vm232_vm0, %v230_v10, %v234_v12  ;;  %v231_v16 = vadd.f32 %v228_v14, %v217_v13 }
  0x8f   : > { %238 = vst [vmem:[%s201_s30] sm:$0xff] %v236_v15 }
  0x90   : > { %vm233_vm1 = vcmp.ge.f32.partialorder %v231_v16, 0.0  ;;  %v235_v17 = vmul.f32 0.2, %v231_v16 }
  0x92   : > { %v237_v18 = vsel %vm233_vm1, %v231_v16, %v235_v17 }
  0x93   : > { %239 = vst [vmem:[%s201_s30 + $0x8] sm:$0xff] %v237_v18 }
  0x94 PF: > { %s13_s14 = sadd.s32 1, %s385_s14   ;;  %s457_s12 = smov %s381_s13 }
  0x95   : > { %p10_p5 = scmp.ge.s32.totalorder %s13_s14, 6   ;;  %s458_s13 = smov %s460_s15 }
  0x97   :  { %12 = sbr.rel (!%p10_p5) target bundleno = 2 (0x2), region = 62 }

// kernel: decoder_forward.13
= control target key start
LH: loop header
LB: loop body
LE: loop exit
PB: predicated region body
PF: predicated region fallthrough
CT: control target
= control target key end

     0   :  { %s739_s12 = smov 0   ;;  %s741_s13 = smov 0   ;;  %s801_s0 = inlined_call_operand.vmem [shape: bf16[4,256,128], index: 0, kind: input, shape index: {}]   ;;  %s802_s1 = inlined_call_operand.vmem [shape: bf16[4,16,256], index: 1, kind: input, shape index: {}]   ;;  %s803_s2 = inlined_call_operand.vmem [shape: f32[4,16,128], index: 2, kind: output, shape index: {0}]   ;;  %s804_s3 = inlined_call_operand.vmem [shape: f32[4,1,16,2], index: 3, kind: output, shape index: {1}]  }
   0x1   :  { %s743_s14 = smov 0  }
   0x2 LB: > { %s26_s15 = sadd.s32 1, %s713_s13  ;;  %p597_p0 = scmp.ge.s32.totalorder %s717_s14, 1  ;;  %s717_s14 = sphi %s743_s14, %s14_s14   ;;  %s713_s13 = sphi %s741_s13, %s806_s13   ;;  %s709_s12 = sphi %s739_s12, %s805_s12  }
   0x3   : > { %p28_p1 = scmp.ge.s32.totalorder %s26_s15, 4  ;;  %p171_p2 = scmp.lt.s32.totalorder %s717_s14, 5 }
   0x5   : > { %s808_s15 = smov (%p28_p1, %s26_s15), 0  ;;  %p172_p3 = pnand %p597_p0, %p171_p2 }
   0x6   : > { %p215_p4 = scmp.lt.s32.totalorder (!%p172_p3), %s709_s12, 3  ;;  %vm433_vm0 = vcmask (!%p172_p3), 7168   ;;  %vm442_vm1 = vcmask (!%p172_p3), 15368  }
   0x7   : > { %175 = sbr.rel (%p172_p3) target bundleno = 414 (0x19e), region = 28 }
   0xe   : > { %s810_s12 = smov (!%p215_p4, %s709_s12), 3 }
   0xf   : > { %s626_s16 = sshll.u32 %s810_s12, 7  ;;  %s770_s20 = sshll.u32 %s810_s12, 4 }
  0x10   : > { %s760_s19 = scalar_lea.vmem %s801_s0, %s626_s16  ;;  %s227_s23 = scalar_lea.vmem %s802_s1, %s770_s20 }
  0x11   : > { %v676_v0 = vld [vmem:[%s760_s19 + $0x40] sm:$0xff]   ;;  %v678_v2 = vld [vmem:[%s760_s19 + $0x48] sm:$0xff]   ;;  %v680_v4 = vld [vmem:[%s760_s19 + $0x50] sm:$0xff]   ;;  %s235_s26 = scalar_lea.vmem %s803_s2, %s770_s20  ;;  %s244_s29 = scalar_lea.vmem %s804_s3, %s770_s20 }
  0x12   : > { %v677_v1 = vld [vmem:[%s760_s19] sm:$0xff]   ;;  %630 = vmatprep.subr.bf16.mxu0 %v676_v0  ;;  %v679_v3 = vld [vmem:[%s760_s19 + $0x8] sm:$0xff]   ;;  %v681_v5 = vld [vmem:[%s760_s19 + $0x10] sm:$0xff]  }
  0x13   : > { %631 = vmatpush3.bf16.msra.mxu0 %v677_v1  ;;  %v682_v6 = vld [vmem:[%s760_s19 + $0x58] sm:$0xff]   ;;  %v684_v8 = vld [vmem:[%s760_s19 + $0x60] sm:$0xff]   ;;  %v686_v10 = vld [vmem:[%s760_s19 + $0x68] sm:$0xff]  }
  0x14   : > { %632 = vmatprep.subr.bf16.mxu0 %v678_v2  ;;  %v683_v7 = vld [vmem:[%s760_s19 + $0x18] sm:$0xff]   ;;  %v685_v9 = vld [vmem:[%s760_s19 + $0x20] sm:$0xff]   ;;  %v687_v12 = vld [vmem:[%s760_s19 + $0x28] sm:$0xff]  }
  0x15   : > { %v694_v11 = vld [vmem:[%s227_s23 + $0x4] ss:$8 sps:$4 sm:$0xff]   ;;  %v688_v13 = vld [vmem:[%s760_s19 + $0x70] sm:$0xff]   ;;  %v690_v15 = vld [vmem:[%s760_s19 + $0x78] sm:$0xff]  }
  0x16   : > { %418 = vmatprep.mubr.bf16.mxu0 %v694_v11  ;;  %v689_v14 = vld [vmem:[%s760_s19 + $0x30] sm:$0xff]   ;;  %v691_v16 = vld [vmem:[%s760_s19 + $0x38] sm:$0xff]   ;;  %v692_v17 = vld [vmem:[%s227_s23] ss:$8 sps:$4 sm:$0xff]  }
  0x17   : > { %633 = vmatpush3.bf16.msra.mxu0 %v679_v3 }
  0x18   : > { %634 = vmatprep.subr.bf16.mxu0 %v680_v4 }
  0x1b   : > { %635 = vmatpush3.bf16.msra.mxu0 %v681_v5 }
  0x1c   : > { %636 = vmatprep.subr.bf16.mxu0 %v682_v6 }
  0x1f   : > { %637 = vmatpush3.bf16.msra.mxu0 %v683_v7 }
  0x20   : > { %638 = vmatprep.subr.bf16.mxu0 %v684_v8 }
  0x23   : > { %639 = vmatpush3.bf16.msra.mxu0 %v685_v9 }
  0x24   : > { %640 = vmatprep.subr.bf16.mxu0 %v686_v10 }
  0x27   : > { %641 = vmatpush3.bf16.msra.mxu0 %v687_v12 }
  0x28   : > { %642 = vmatprep.subr.bf16.mxu0 %v688_v13 }
  0x2b   : > { %643 = vmatpush3.bf16.msra.mxu0 %v689_v14 }
  0x2c   : > { %644 = vmatprep.subr.bf16.mxu0 %v690_v15 }
  0x2f   : > { %645 = vmatpush3.bf16.msra.mxu0 %v691_v16 }
  0x32   : > { %419 = vmatmul.mubr.bf16.vlgmr.msra.gmra.mrb[0].mxu0 %v692_v17 }
 0x105   : > { %v646_v18 = vpop.f32.mrb[0].mxu0 }
 0x106   : > { %v647_v19 = vpop.f32.mrb[1].mxu0 }
 0x107   : > { %v648_v20 = vadd.f32 %v647_v19, %v646_v18  ;;  %v649_v21 = vpop.f32.mrb[2].mxu0 }
 0x108   : > { %v650_v22 = vpop.f32.mrb[3].mxu0 }
 0x109   : > { %427 = vst [vmem:[%s235_s26] sm:$0xff] %v648_v20  ;;  %v651_v23 = vadd.f32 %v650_v22, %v649_v21  ;;  %429 = vadd.xlane.f32.xlu0 %v648_v20  ;;  %v436_v24 = vmul.f32 %v648_v20, %v648_v20 }
 0x10b   : > { %428 = vst [vmem:[%s235_s26 + $0x8] sm:$0xff] %v651_v23  ;;  %438 = vadd.xlane.f32.xlu1 %v436_v24  ;;  %v437_v25 = vmul.f32 %v651_v23, %v651_v23 }
 0x10d   : > { %431 = vadd.xlane.f32.xlu0 %v651_v23 }
 0x10f   : > { %440 = vadd.xlane.f32.xlu1 %v437_v25 }
 0x196   : > { %v430_v26 = vpop.xlane.xlu0 %429 }
 0x197   : > { %434 = vst.msk [vmem:[%s244_s29] sm:$0xff] %vm433_vm0, %v430_v26 }
 0x198   : > { %v439_v27 = vpop.xlane.xlu1 %438 }
 0x199   : > { %443 = vst.msk [vmem:[%s244_s29] sm:$0xff] %vm442_vm1, %v439_v27 }
 0x19a   : > { %v432_v28 = vpop.xlane.xlu0 %431 }
 0x19b   : > { %435 = vst.msk [vmem:[%s244_s29 + $0x8] sm:$0xff] %vm433_vm0, %v432_v28 }
 0x19c   : > { %v441_v29 = vpop.xlane.xlu1 %440 }
 0x19d   : > { %444 = vst.msk [vmem:[%s244_s29 + $0x8] sm:$0xff] %vm442_vm1, %v441_v29 }
 0x19e PF: > { %s14_s14 = sadd.s32 1, %s717_s14   ;;  %s805_s12 = smov %s713_s13 }
 0x19f   : > { %p11_p5 = scmp.ge.s32.totalorder %s14_s14, 6   ;;  %s806_s13 = smov %s808_s15 }
 0x1a1   :  { %13 = sbr.rel (!%p11_p5) target bundleno = 2 (0x2), region = 73 }

// kernel: decoder_forward.15
= control target key start
LH: loop header
LB: loop body
LE: loop exit
PB: predicated region body
PF: predicated region fallthrough
CT: control target
= control target key end

     0   :  { %s849_s12 = smov 0   ;;  %s851_s13 = smov 0   ;;  %s928_s0 = inlined_call_operand.vmem [shape: bf16[4,128,512], index: 0, kind: input, shape index: {}]   ;;  %s929_s1 = inlined_call_operand.vmem [shape: bf16[4,8,128], index: 1, kind: input, shape index: {}]   ;;  %s930_s2 = inlined_call_operand.vmem [shape: f32[4,8,512], index: 2, kind: output, shape index: {0}]   ;;  %s931_s3 = inlined_call_operand.vmem [shape: f32[4,1,8,2], index: 3, kind: output, shape index: {1}]  }
   0x1   :  { %s853_s14 = smov 0  }
   0x2 LB: > { %s26_s15 = sadd.s32 1, %s822_s13  ;;  %p688_p0 = scmp.ge.s32.totalorder %s826_s14, 1  ;;  %s826_s14 = sphi %s853_s14, %s14_s14   ;;  %s822_s13 = sphi %s851_s13, %s933_s13   ;;  %s818_s12 = sphi %s849_s12, %s932_s12  }
   0x3   : > { %p28_p1 = scmp.ge.s32.totalorder %s26_s15, 4  ;;  %p172_p2 = scmp.lt.s32.totalorder %s826_s14, 5 }
   0x5   : > { %s935_s15 = smov (%p28_p1, %s26_s15), 0  ;;  %p173_p3 = pnand %p688_p0, %p172_p2 }
   0x6   : > { %p216_p4 = scmp.lt.s32.totalorder (!%p173_p3), %s818_s12, 3  ;;  %v828_v0 = vmov (!%p173_p3), 0   ;;  %vm531_vm0 = vcmask (!%p173_p3), 7168   ;;  %vm542_vm1 = vcmask (!%p173_p3), 15368  }
   0x7   : > { %176 = sbr.rel (%p173_p3) target bundleno = 416 (0x1a0), region = 28  ;;  %472 = vmatprep.mubr.bf16.mxu0 (!%p173_p3), %v828_v0  ;;  %513 = vmatprep.mubr.bf16.mxu1 (!%p173_p3), %v828_v0 }
   0xe   : > { %s937_s12 = smov (!%p216_p4, %s818_s12), 3 }
   0xf   : > { %s729_s16 = sshll.u32 %s937_s12, 8  ;;  %s691_s20 = sshll.u32 %s937_s12, 2 }
  0x10   : > { %s873_s19 = scalar_lea.vmem %s928_s0, %s729_s16  ;;  %s228_s23 = scalar_lea.vmem %s929_s1, %s691_s20 }
  0x11   : > { %v756_v1 = vld [vmem:[%s873_s19 + $0x4] ss:$16 sps:$4 sm:$0xff]   ;;  %v758_v2 = vld [vmem:[%s873_s19 + $0xc] ss:$16 sps:$4 sm:$0xff]   ;;  %v760_v3 = vld [vmem:[%s873_s19] ss:$16 sps:$4 sm:$0xff]  }
  0x12   : > { %440 = vmatprep.subr.bf16.mxu0 %v756_v1  ;;  %v761_v4 = vld [vmem:[%s873_s19 + $0x8] ss:$16 sps:$4 sm:$0xff]   ;;  %481 = vmatprep.subr.bf16.mxu1 %v758_v2  ;;  %v762_v5 = vld [vmem:[%s873_s19 + $0x24] ss:$16 sps:$4 sm:$0xff]   ;;  %v764_v6 = vld [vmem:[%s873_s19 + $0x2c] ss:$16 sps:$4 sm:$0xff]  }
  0x13   : > { %441 = vmatpush1.bf16.msra.mxu0 %v760_v3  ;;  %482 = vmatpush1.bf16.msra.mxu1 %v761_v4  ;;  %v766_v7 = vld [vmem:[%s873_s19 + $0x20] ss:$16 sps:$4 sm:$0xff]   ;;  %v767_v8 = vld [vmem:[%s873_s19 + $0x28] ss:$16 sps:$4 sm:$0xff]   ;;  %v768_v9 = vld [vmem:[%s873_s19 + $0x44] ss:$16 sps:$4 sm:$0xff]  }
  0x14   : > { %442 = vmatprep.subr.bf16.mxu0 %v762_v5  ;;  %483 = vmatprep.subr.bf16.mxu1 %v764_v6  ;;  %v770_v10 = vld [vmem:[%s873_s19 + $0x4c] ss:$16 sps:$4 sm:$0xff]   ;;  %v772_v11 = vld [vmem:[%s873_s19 + $0x40] ss:$16 sps:$4 sm:$0xff]   ;;  %v773_v12 = vld [vmem:[%s873_s19 + $0x48] ss:$16 sps:$4 sm:$0xff]  }
  0x15   : > { %v774_v13 = vld [vmem:[%s873_s19 + $0x64] ss:$16 sps:$4 sm:$0xff]   ;;  %v776_v14 = vld [vmem:[%s873_s19 + $0x6c] ss:$16 sps:$4 sm:$0xff]   ;;  %v778_v15 = vld [vmem:[%s873_s19 + $0x60] ss:$16 sps:$4 sm:$0xff]  }
  0x16   : > { %v779_v16 = vld [vmem:[%s873_s19 + $0x68] ss:$16 sps:$4 sm:$0xff]   ;;  %v780_v17 = vld [vmem:[%s873_s19 + $0x84] ss:$16 sps:$4 sm:$0xff]   ;;  %v782_v18 = vld [vmem:[%s873_s19 + $0x8c] ss:$16 sps:$4 sm:$0xff]  }
  0x17   : > { %443 = vmatpush1.bf16.msra.mxu0 %v766_v7  ;;  %484 = vmatpush1.bf16.msra.mxu1 %v767_v8  ;;  %v784_v19 = vld [vmem:[%s873_s19 + $0x80] ss:$16 sps:$4 sm:$0xff]   ;;  %v785_v20 = vld [vmem:[%s873_s19 + $0x88] ss:$16 sps:$4 sm:$0xff]   ;;  %v786_v21 = vld [vmem:[%s873_s19 + $0xa4] ss:$16 sps:$4 sm:$0xff]  }
  0x18   : > { %444 = vmatprep.subr.bf16.mxu0 %v768_v9  ;;  %485 = vmatprep.subr.bf16.mxu1 %v770_v10  ;;  %v788_v22 = vld [vmem:[%s873_s19 + $0xac] ss:$16 sps:$4 sm:$0xff]   ;;  %v790_v23 = vld [vmem:[%s873_s19 + $0xa0] ss:$16 sps:$4 sm:$0xff]   ;;  %v791_v24 = vld [vmem:[%s873_s19 + $0xa8] ss:$16 sps:$4 sm:$0xff]  }
  0x19   : > { %v792_v25 = vld [vmem:[%s873_s19 + $0xc4] ss:$16 sps:$4 sm:$0xff]   ;;  %v794_v26 = vld [vmem:[%s873_s19 + $0xcc] ss:$16 sps:$4 sm:$0xff]   ;;  %v796_v27 = vld [vmem:[%s873_s19 + $0xc0] ss:$16 sps:$4 sm:$0xff]  }
  0x1a   : > { %v797_v28 = vld [vmem:[%s873_s19 + $0xc8] ss:$16 sps:$4 sm:$0xff]   ;;  %v798_v29 = vld [vmem:[%s873_s19 + $0xe4] ss:$16 sps:$4 sm:$0xff]   ;;  %v800_v30 = vld [vmem:[%s873_s19 + $0xec] ss:$16 sps:$4 sm:$0xff]  }
  0x1b   : > { %445 = vmatpush1.bf16.msra.mxu0 %v772_v11  ;;  %486 = vmatpush1.bf16.msra.mxu1 %v773_v12  ;;  %v802_v31 = vld [vmem:[%s873_s19 + $0xe0] ss:$16 sps:$4 sm:$0xff]   ;;  %v803_v32 = vld [vmem:[%s873_s19 + $0xe8] ss:$16 sps:$4 sm:$0xff]   ;;  %s730_s24 = sshll.u32 %s937_s12, 5  ;;  %s694_s28 = sshll.u32 %s937_s12, 3 }
  0x1c   : > { %446 = vmatprep.subr.bf16.mxu0 %v774_v13  ;;  %487 = vmatprep.subr.bf16.mxu1 %v776_v14  ;;  %v247_v33 = vld [vmem:[%s228_s23] sm:$0xf]  ;;  %s237_s27 = scalar_lea.vmem %s930_s2, %s730_s24  ;;  %s245_s4 = scalar_lea.vmem %s931_s3, %s694_s28 }
  0x1f   : > { %447 = vmatpush1.bf16.msra.mxu0 %v778_v15  ;;  %488 = vmatpush1.bf16.msra.mxu1 %v779_v16 }
  0x20   : > { %448 = vmatprep.subr.bf16.mxu0 %v780_v17  ;;  %489 = vmatprep.subr.bf16.mxu1 %v782_v18 }
  0x23   : > { %449 = vmatpush1.bf16.msra.mxu0 %v784_v19  ;;  %490 = vmatpush1.bf16.msra.mxu1 %v785_v20 }
  0x24   : > { %450 = vmatprep.subr.bf16.mxu0 %v786_v21  ;;  %491 = vmatprep.subr.bf16.mxu1 %v788_v22 }
  0x27   : > { %451 = vmatpush1.bf16.msra.mxu0 %v790_v23  ;;  %492 = vmatpush1.bf16.msra.mxu1 %v791_v24 }
  0x28   : > { %452 = vmatprep.subr.bf16.mxu0 %v792_v25  ;;  %493 = vmatprep.subr.bf16.mxu1 %v794_v26 }
  0x2b   : > { %453 = vmatpush1.bf16.msra.mxu0 %v796_v27  ;;  %494 = vmatpush1.bf16.msra.mxu1 %v797_v28 }
  0x2c   : > { %454 = vmatprep.subr.bf16.mxu0 %v798_v29  ;;  %495 = vmatprep.subr.bf16.mxu1 %v800_v30 }
  0x2f   : > { %455 = vmatpush1.bf16.msra.mxu0 %v802_v31  ;;  %496 = vmatpush1.bf16.msra.mxu1 %v803_v32 }
  0x32   : > { %473 = vmatmul.mubr.bf16.vlgmr.msra.gmra.mrb[0].mxu0 %v247_v33  ;;  %514 = vmatmul.mubr.bf16.vlgmr.msra.gmra.mrb[0].mxu1 %v247_v33 }
 0x105   : > { %v474_v34 = vpop.f32.mrb[0].mxu0  ;;  %v515_v35 = vpop.f32.mrb[0].mxu1 }
 0x106   : > { %522 = vst [vmem:[%s237_s27] sm:$0xff] %v474_v34  ;;  %v533_v36 = vmul.f32 %v474_v34, %v474_v34  ;;  %524 = vst [vmem:[%s237_s27 + $0x10] sm:$0xff] %v515_v35  ;;  %v476_v37 = vpop.f32.mrb[1].mxu0  ;;  %v517_v38 = vpop.f32.mrb[1].mxu1  ;;  %v535_v39 = vmul.f32 %v515_v35, %v515_v35 }
 0x107   : > { %523 = vst [vmem:[%s237_s27 + $0x8] sm:$0xff] %v476_v37  ;;  %v526_v40 = vadd.f32 %v476_v37, %v474_v34  ;;  %v534_v41 = vmul.f32 %v476_v37, %v476_v37  ;;  %525 = vst [vmem:[%s237_s27 + $0x18] sm:$0xff] %v517_v38  ;;  %v478_v42 = vpop.f32.mrb[2].mxu0  ;;  %v519_v43 = vpop.f32.mrb[2].mxu1  ;;  %v536_v49 = vmul.f32 %v517_v38, %v517_v38 }
 0x108   : > { %v479_v44 = vpop.f32.mrb[3].mxu0  ;;  %v520_v45 = vpop.f32.mrb[3].mxu1 }
 0x109   : > { %v527_v46 = vadd.f32 %v526_v40, %v515_v35  ;;  %v537_v47 = vadd.f32 %v534_v41, %v533_v36 }
 0x10b   : > { %v528_v48 = vadd.f32 %v527_v46, %v517_v38  ;;  %v538_v50 = vadd.f32 %v537_v47, %v535_v39 }
 0x10d   : > { %529 = vadd.xlane.f32.xlu0 %v528_v48  ;;  %v539_v51 = vadd.f32 %v538_v50, %v536_v49 }
 0x111   : > { %540 = vadd.xlane.f32.xlu0 %v539_v51 }
 0x19a   : > { %v530_v52 = vpop.xlane.xlu0 %529 }
 0x19b   : > { %532 = vst.msk [vmem:[%s245_s4] sm:$0xff] %vm531_vm0, %v530_v52 }
 0x19e   : > { %v541_v53 = vpop.xlane.xlu0 %540 }
 0x19f   : > { %543 = vst.msk [vmem:[%s245_s4] sm:$0xff] %vm542_vm1, %v541_v53 }
 0x1a0 PF: > { %s14_s14 = sadd.s32 1, %s826_s14   ;;  %s932_s12 = smov %s822_s13 }
 0x1a1   : > { %p11_p5 = scmp.ge.s32.totalorder %s14_s14, 6   ;;  %s933_s13 = smov %s935_s15 }
 0x1a3   :  { %13 = sbr.rel (!%p11_p5) target bundleno = 2 (0x2), region = 73 }

// kernel: decoder_forward.16
= control target key start
LH: loop header
LB: loop body
LE: loop exit
PB: predicated region body
PF: predicated region fallthrough
CT: control target
= control target key end

     0   :  { %s421_s12 = smov 0   ;;  %s423_s13 = smov 0   ;;  %s460_s0 = inlined_call_operand.vmem [shape: f32[4,8,512], index: 0, kind: input, shape index: {}]   ;;  %s461_s1 = inlined_call_operand.vmem [shape: f32[8,1], index: 1, kind: input, shape index: {}]   ;;  %s462_s2 = inlined_call_operand.vmem [shape: f32[8,1], index: 2, kind: input, shape index: {}]   ;;  %s463_s3 = inlined_call_operand.vmem [shape: f32[4,8,512], index: 3, kind: output, shape index: {}]  }
   0x1   :  { %s425_s14 = smov 0  }
   0x2 LB: > { %s25_s15 = sadd.s32 1, %s394_s13  ;;  %p341_p0 = scmp.ge.s32.totalorder %s398_s14, 1  ;;  %s398_s14 = sphi %s425_s14, %s13_s14   ;;  %s394_s13 = sphi %s423_s13, %s465_s13   ;;  %s390_s12 = sphi %s421_s12, %s464_s12  }
   0x3   : > { %p27_p1 = scmp.ge.s32.totalorder %s25_s15, 4  ;;  %p158_p2 = scmp.lt.s32.totalorder %s398_s14, 5 }
   0x5   : > { %s467_s15 = smov (%p27_p1, %s25_s15), 0  ;;  %p159_p3 = pnand %p341_p0, %p158_p2 }
   0x6   : > { %v214_v0 = vld [vmem:[%s461_s1] sm:$0xff] (!%p159_p3)  ;;  %v400_v1 = vmov (!%p159_p3), 0   ;;  %p191_p4 = scmp.lt.s32.totalorder (!%p159_p3), %s390_s12, 3 }
   0x7   : > { %162 = sbr.rel (%p159_p3) target bundleno = 148 (0x94), region = 32  ;;  %375 = vset.pattern.permute.xlu0 (!%p159_p3), %v400_v1  ;;  %v224_v2 = vld [vmem:[%s462_s2] sm:$0xff] (!%p159_p3) }
   0x8   : > { %217 = vperm.xlu0 (!%p159_p3), %375, %v214_v0  }
   0xc   : > { %227 = vperm.xlu0 (!%p159_p3), %375, %v224_v2  }
   0xe   : > { %s469_s12 = smov (!%p191_p4, %s390_s12), 3 }
   0xf   : > { %s348_s20 = sshll.u32 %s469_s12, 5 }
  0x10   : > { %s198_s23 = scalar_lea.vmem %s460_s0, %s348_s20  ;;  %s208_s26 = scalar_lea.vmem %s463_s3, %s348_s20 }
  0x11   : > { %v210_v3 = vld [vmem:[%s198_s23] sm:$0xff]  ;;  %v211_v5 = vld [vmem:[%s198_s23 + $0x8] sm:$0xff]  ;;  %v212_v6 = vld [vmem:[%s198_s23 + $0x10] sm:$0xff] }
  0x12   : > { %v213_v7 = vld [vmem:[%s198_s23 + $0x18] sm:$0xff] }
  0x87   : > { %v218_v4 = vpop.permute.xlu0 %217 }
  0x88   : > { %v220_v8 = vmul.f32 %v218_v4, %v210_v3  ;;  %v221_v9 = vmul.f32 %v218_v4, %v211_v5  ;;  %v222_v10 = vmul.f32 %v218_v4, %v212_v6  ;;  %v223_v11 = vmul.f32 %v218_v4, %v213_v7 }
  0x8b   : > { %v228_v12 = vpop.permute.xlu0 %227 }
  0x8c   : > { %v230_v13 = vadd.f32 %v228_v12, %v220_v8  ;;  %v231_v14 = vadd.f32 %v228_v12, %v221_v9  ;;  %v232_v15 = vadd.f32 %v228_v12, %v222_v10  ;;  %v233_v16 = vadd.f32 %v228_v12, %v223_v11 }
  0x8e   : > { %vm234_vm0 = vcmp.ge.f32.partialorder %v230_v13, 0.0  ;;  %vm235_vm1 = vcmp.ge.f32.partialorder %v231_v14, 0.0  ;;  %vm236_vm2 = vcmp.ge.f32.partialorder %v232_v15, 0.0  ;;  %vm237_vm3 = vcmp.ge.f32.partialorder %v233_v16, 0.0 }
  0x8f   : > { %v238_v17 = vmul.f32 0.2, %v230_v13  ;;  %v239_v18 = vmul.f32 0.2, %v231_v14  ;;  %v240_v19 = vmul.f32 0.2, %v232_v15 }
  0x90   : > { %v241_v20 = vmul.f32 0.2, %v233_v16 }
  0x91   : > { %v242_v21 = vsel %vm234_vm0, %v230_v13, %v238_v17  ;;  %v243_v22 = vsel %vm235_vm1, %v231_v14, %v239_v18  ;;  %v244_v23 = vsel %vm236_vm2, %v232_v15, %v240_v19 }
  0x92   : > { %v245_v24 = vsel %vm237_vm3, %v233_v16, %v241_v20  ;;  %246 = vst [vmem:[%s208_s26] sm:$0xff] %v242_v21  ;;  %247 = vst [vmem:[%s208_s26 + $0x8] sm:$0xff] %v243_v22 }
  0x93   : > { %248 = vst [vmem:[%s208_s26 + $0x10] sm:$0xff] %v244_v23  ;;  %249 = vst [vmem:[%s208_s26 + $0x18] sm:$0xff] %v245_v24 }
  0x94 PF: > { %s13_s14 = sadd.s32 1, %s398_s14   ;;  %s464_s12 = smov %s394_s13 }
  0x95   : > { %p10_p5 = scmp.ge.s32.totalorder %s13_s14, 6   ;;  %s465_s13 = smov %s467_s15 }
  0x97   :  { %12 = sbr.rel (!%p10_p5) target bundleno = 2 (0x2), region = 62 }

// kernel: decoder_forward.17
= control target key start
LH: loop header
LB: loop body
LE: loop exit
PB: predicated region body
PF: predicated region fallthrough
CT: control target
= control target key end

     0   :  { %s1495_s14 = smov 0   ;;  %s1497_s15 = smov 0   ;;  %s1671_s0 = inlined_call_operand.vmem [shape: bf16[4,64,2048], index: 0, kind: input, shape index: {}]   ;;  %s1672_s1 = inlined_call_operand.vmem [shape: bf16[4,1,64], index: 1, kind: input, shape index: {}]   ;;  %s1673_s2 = inlined_call_operand.<no memory space> [shape: f32[1,1], index: 2, kind: input, shape index: {}]   ;;  %s1674_s3 = inlined_call_operand.vmem [shape: f32[4,1,2048], index: 3, kind: output, shape index: {}]  }
   0x1   :  { %v8_v0 = vstv %s1673_s2  ;;  %s1499_s16 = smov 0  }
   0x2   :  { %9 = vst [vmem:[#allocation2] sm:$0x1] %v8_v0 }
   0x3 LB: > { %s27_s2 = sadd.s32 1, %s1464_s15  ;;  %p1260_p0 = scmp.ge.s32.totalorder %s1468_s16, 1  ;;  %s1468_s16 = sphi %s1499_s16, %s15_s16   ;;  %s1464_s15 = sphi %s1497_s15, %s1676_s15   ;;  %s1460_s14 = sphi %s1495_s14, %s1675_s14  }
   0x4   : > { %p29_p1 = scmp.ge.s32.totalorder %s27_s2, 4  ;;  %p168_p2 = scmp.lt.s32.totalorder %s1468_s16, 5 }
   0x6   : > { %s1678_s2 = smov (%p29_p1, %s27_s2), 0  ;;  %p169_p3 = pnand %p1260_p0, %p168_p2 }
   0x7   : > { %p203_p4 = scmp.lt.s32.totalorder (!%p169_p3), %s1460_s14, 3  ;;  %v1470_v2 = vmov (!%p169_p3), 0   ;;  %vm620_vm0 = vcmask (!%p169_p3), 523264  }
   0x8   : > { %172 = sbr.rel (%p169_p3) target bundleno = 344 (0x158), region = 32  ;;  %656 = vmatprep.mubr.bf16.mxu0 (!%p169_p3), %v1470_v2  ;;  %697 = vmatprep.mubr.bf16.mxu1 (!%p169_p3), %v1470_v2 }
   0x9   : > { %v290_v1 = vld [vmem:[#allocation2] sm:$0x1] (!%p169_p3)  ;;  %1381 = vset.pattern.permute.xlu0 (!%p169_p3), %v1470_v2 }
   0xa   : > { %293 = vperm.xlu0 (!%p169_p3), %1381, %v290_v1  }
   0xf   : > { %s1680_s14 = smov (!%p203_p4, %s1460_s14), 3 }
  0x10   : > { %s1354_s17 = sshll.u32 %s1680_s14, 9  ;;  %s214_s23 = scalar_lea.vmem %s1672_s1, %s1680_s14 }
  0x11   : > { %s1522_s20 = scalar_lea.vmem %s1671_s0, %s1354_s17  ;;  %v1552_v45 = vld [vmem:[%s214_s23] sm:$0x1]  ;;  %s1263_s24 = sshll.u32 %s1680_s14, 4 }
  0x12   : > { %v226_v3 = vld [vmem:[%s1522_s20] sm:$0xff]  ;;  %v227_v5 = vld [vmem:[%s1522_s20 + $0x8] sm:$0xff]  ;;  %v228_v33 = vld [vmem:[%s1522_s20 + $0x10] sm:$0xff]  ;;  %s1652_s27 = scalar_lea.vmem %s1674_s3, %s1263_s24 }
  0x13   : > { %v234_v4 = vld [vmem:[%s1522_s20 + $0x40] sm:$0xff]  ;;  %v235_v7 = vld [vmem:[%s1522_s20 + $0x48] sm:$0xff]  ;;  %v236_v34 = vld [vmem:[%s1522_s20 + $0x50] sm:$0xff] }
  0x14   : > { %v1265_v6 = vcombine.high %v226_v3, %v234_v4  ;;  %v1264_v8 = vcombine.low %v226_v3, %v234_v4  ;;  %v242_v9 = vld [vmem:[%s1522_s20 + $0x80] sm:$0xff]  ;;  %v1267_v11 = vcombine.high %v227_v5, %v235_v7  ;;  %v1266_v12 = vcombine.low %v227_v5, %v235_v7  ;;  %v243_v14 = vld [vmem:[%s1522_s20 + $0x88] sm:$0xff]  ;;  %v229_v35 = vld [vmem:[%s1522_s20 + $0x18] sm:$0xff] }
  0x15   : > { %v250_v10 = vld [vmem:[%s1522_s20 + $0xc0] sm:$0xff]  ;;  %v251_v15 = vld [vmem:[%s1522_s20 + $0xc8] sm:$0xff]  ;;  %v237_v36 = vld [vmem:[%s1522_s20 + $0x58] sm:$0xff]  ;;  %v1269_v39 = vcombine.high %v228_v33, %v236_v34  ;;  %v1268_v46 = vcombine.low %v228_v33, %v236_v34 }
  0x16   : > { %v1281_v13 = vcombine.high %v242_v9, %v250_v10  ;;  %v258_v16 = vld [vmem:[%s1522_s20 + $0x100] sm:$0xff]  ;;  %624 = vmatprep.subr.bf16.mxu0 %v1265_v6  ;;  %v1283_v17 = vcombine.high %v243_v14, %v251_v15  ;;  %v259_v19 = vld [vmem:[%s1522_s20 + $0x108] sm:$0xff]  ;;  %665 = vmatprep.subr.bf16.mxu1 %v1267_v11  ;;  %v1280_v21 = vcombine.low %v242_v9, %v250_v10  ;;  %v244_v41 = vld [vmem:[%s1522_s20 + $0x90] sm:$0xff] }
  0x17   : > { %v266_v18 = vld [vmem:[%s1522_s20 + $0x140] sm:$0xff]  ;;  %v267_v20 = vld [vmem:[%s1522_s20 + $0x148] sm:$0xff]  ;;  %625 = vmatpush1.bf16.msra.mxu0 %v1264_v8  ;;  %666 = vmatpush1.bf16.msra.mxu1 %v1266_v12  ;;  %v1282_v22 = vcombine.low %v243_v14, %v251_v15  ;;  %v1271_v40 = vcombine.high %v229_v35, %v237_v36  ;;  %v252_v42 = vld [vmem:[%s1522_s20 + $0xd0] sm:$0xff]  ;;  %v1270_v47 = vcombine.low %v229_v35, %v237_v36 }
  0x18   : > { %626 = vmatprep.subr.bf16.mxu0 %v1281_v13  ;;  %v1297_v23 = vcombine.high %v258_v16, %v266_v18  ;;  %667 = vmatprep.subr.bf16.mxu1 %v1283_v17  ;;  %v1299_v24 = vcombine.high %v259_v19, %v267_v20  ;;  %v274_v25 = vld [vmem:[%s1522_s20 + $0x180] sm:$0xff]  ;;  %v275_v27 = vld [vmem:[%s1522_s20 + $0x188] sm:$0xff]  ;;  %v1296_v29 = vcombine.low %v258_v16, %v266_v18  ;;  %v245_v43 = vld [vmem:[%s1522_s20 + $0x98] sm:$0xff] }
  0x19   : > { %v282_v26 = vld [vmem:[%s1522_s20 + $0x1c0] sm:$0xff]  ;;  %v283_v28 = vld [vmem:[%s1522_s20 + $0x1c8] sm:$0xff]  ;;  %v1298_v30 = vcombine.low %v259_v19, %v267_v20  ;;  %v253_v44 = vld [vmem:[%s1522_s20 + $0xd8] sm:$0xff]  ;;  %v1285_v48 = vcombine.high %v244_v41, %v252_v42  ;;  %v1284_v54 = vcombine.low %v244_v41, %v252_v42 }
  0x1a   : > { %v1313_v31 = vcombine.high %v274_v25, %v282_v26  ;;  %v1315_v32 = vcombine.high %v275_v27, %v283_v28  ;;  %v1312_v37 = vcombine.low %v274_v25, %v282_v26  ;;  %v1314_v38 = vcombine.low %v275_v27, %v283_v28  ;;  %v260_v50 = vld [vmem:[%s1522_s20 + $0x110] sm:$0xff]  ;;  %v261_v52 = vld [vmem:[%s1522_s20 + $0x118] sm:$0xff]  ;;  %v230_v3 = vld [vmem:[%s1522_s20 + $0x20] sm:$0xff] }
  0x1b   : > { %627 = vmatpush1.bf16.msra.mxu0 %v1280_v21  ;;  %668 = vmatpush1.bf16.msra.mxu1 %v1282_v22  ;;  %v1287_v49 = vcombine.high %v245_v43, %v253_v44  ;;  %v268_v51 = vld [vmem:[%s1522_s20 + $0x150] sm:$0xff]  ;;  %v269_v53 = vld [vmem:[%s1522_s20 + $0x158] sm:$0xff]  ;;  %v1286_v55 = vcombine.low %v245_v43, %v253_v44  ;;  %v238_v4 = vld [vmem:[%s1522_s20 + $0x60] sm:$0xff] }
  0x1c   : > { %628 = vmatprep.subr.bf16.mxu0 %v1297_v23  ;;  %669 = vmatprep.subr.bf16.mxu1 %v1299_v24  ;;  %v1301_v56 = vcombine.high %v260_v50, %v268_v51  ;;  %v1303_v57 = vcombine.high %v261_v52, %v269_v53  ;;  %v276_v58 = vld [vmem:[%s1522_s20 + $0x190] sm:$0xff]  ;;  %v277_v60 = vld [vmem:[%s1522_s20 + $0x198] sm:$0xff]  ;;  %v1300_v62 = vcombine.low %v260_v50, %v268_v51  ;;  %v231_v5 = vld [vmem:[%s1522_s20 + $0x28] sm:$0xff] }
  0x1d   : > { %v284_v59 = vld [vmem:[%s1522_s20 + $0x1d0] sm:$0xff]  ;;  %v285_v61 = vld [vmem:[%s1522_s20 + $0x1d8] sm:$0xff]  ;;  %v1302_v63 = vcombine.low %v261_v52, %v269_v53  ;;  %v239_v6 = vld [vmem:[%s1522_s20 + $0x68] sm:$0xff]  ;;  %v1273_v9 = vcombine.high %v230_v3, %v238_v4  ;;  %v1272_v15 = vcombine.low %v230_v3, %v238_v4 }
  0x1e   : > { %v1317_v0 = vcombine.high %v276_v58, %v284_v59  ;;  %v1319_v1 = vcombine.high %v277_v60, %v285_v61  ;;  %v1316_v7 = vcombine.low %v276_v58, %v284_v59  ;;  %v1318_v8 = vcombine.low %v277_v60, %v285_v61  ;;  %v246_v11 = vld [vmem:[%s1522_s20 + $0xa0] sm:$0xff]  ;;  %v247_v13 = vld [vmem:[%s1522_s20 + $0xa8] sm:$0xff]  ;;  %v232_v35 = vld [vmem:[%s1522_s20 + $0x30] sm:$0xff] }
  0x1f   : > { %629 = vmatpush1.bf16.msra.mxu0 %v1296_v29  ;;  %670 = vmatpush1.bf16.msra.mxu1 %v1298_v30  ;;  %v1275_v10 = vcombine.high %v231_v5, %v239_v6  ;;  %v254_v12 = vld [vmem:[%s1522_s20 + $0xe0] sm:$0xff]  ;;  %v255_v14 = vld [vmem:[%s1522_s20 + $0xe8] sm:$0xff]  ;;  %v1274_v16 = vcombine.low %v231_v5, %v239_v6  ;;  %v240_v36 = vld [vmem:[%s1522_s20 + $0x70] sm:$0xff] }
  0x20   : > { %630 = vmatprep.subr.bf16.mxu0 %v1313_v31  ;;  %671 = vmatprep.subr.bf16.mxu1 %v1315_v32  ;;  %v1289_v17 = vcombine.high %v246_v11, %v254_v12  ;;  %v1291_v18 = vcombine.high %v247_v13, %v255_v14  ;;  %v262_v19 = vld [vmem:[%s1522_s20 + $0x120] sm:$0xff]  ;;  %v263_v21 = vld [vmem:[%s1522_s20 + $0x128] sm:$0xff]  ;;  %v1288_v23 = vcombine.low %v246_v11, %v254_v12  ;;  %v248_v43 = vld [vmem:[%s1522_s20 + $0xb0] sm:$0xff] }
  0x21   : > { %v270_v20 = vld [vmem:[%s1522_s20 + $0x160] sm:$0xff]  ;;  %v271_v22 = vld [vmem:[%s1522_s20 + $0x168] sm:$0xff]  ;;  %v1290_v24 = vcombine.low %v247_v13, %v255_v14  ;;  %v1277_v41 = vcombine.high %v232_v35, %v240_v36  ;;  %v256_v44 = vld [vmem:[%s1522_s20 + $0xf0] sm:$0xff] }
  0x22   : > { %v1305_v25 = vcombine.high %v262_v19, %v270_v20  ;;  %v1307_v26 = vcombine.high %v263_v21, %v271_v22  ;;  %v278_v27 = vld [vmem:[%s1522_s20 + $0x1a0] sm:$0xff]  ;;  %v279_v29 = vld [vmem:[%s1522_s20 + $0x1a8] sm:$0xff]  ;;  %v1304_v31 = vcombine.low %v262_v19, %v270_v20  ;;  %v1306_v32 = vcombine.low %v263_v21, %v271_v22  ;;  %v264_v52 = vld [vmem:[%s1522_s20 + $0x130] sm:$0xff] }
  0x23   : > { %631 = vmatpush1.bf16.msra.mxu0 %v1312_v37  ;;  %672 = vmatpush1.bf16.msra.mxu1 %v1314_v38  ;;  %v286_v28 = vld [vmem:[%s1522_s20 + $0x1e0] sm:$0xff]  ;;  %v287_v30 = vld [vmem:[%s1522_s20 + $0x1e8] sm:$0xff]  ;;  %v233_v37 = vld [vmem:[%s1522_s20 + $0x38] sm:$0xff]  ;;  %v1293_v50 = vcombine.high %v248_v43, %v256_v44 }
  0x24   : > { %706 = vmatprep.subr.bf16.mxu0 %v1269_v39  ;;  %747 = vmatprep.subr.bf16.mxu1 %v1271_v40  ;;  %v1321_v33 = vcombine.high %v278_v27, %v286_v28  ;;  %v1323_v34 = vcombine.high %v279_v29, %v287_v30  ;;  %v241_v38 = vld [vmem:[%s1522_s20 + $0x78] sm:$0xff]  ;;  %v1320_v39 = vcombine.low %v278_v27, %v286_v28  ;;  %v272_v53 = vld [vmem:[%s1522_s20 + $0x170] sm:$0xff] }
  0x25   : > { %v1322_v40 = vcombine.low %v279_v29, %v287_v30  ;;  %v1279_v42 = vcombine.high %v233_v37, %v241_v38  ;;  %v1309_v58 = vcombine.high %v264_v52, %v272_v53  ;;  %v280_v60 = vld [vmem:[%s1522_s20 + $0x1b0] sm:$0xff] }
  0x26   : > { %1328 = vmatmul.mubr.msk.bf16.vlgmr.msra.gmra.mrb[0].mxu0 %vm620_vm0, %v1552_v45  ;;  %1329 = vmatmul.mubr.msk.bf16.vlgmr.msra.gmra.mrb[0].mxu1 %vm620_vm0, %v1552_v45  ;;  %v288_v61 = vld [vmem:[%s1522_s20 + $0x1f0] sm:$0xff] }
  0x27   : > { %707 = vmatpush1.bf16.msra.mxu0 %v1268_v46  ;;  %748 = vmatpush1.bf16.msra.mxu1 %v1270_v47  ;;  %v249_v46 = vld [vmem:[%s1522_s20 + $0xb8] sm:$0xff]  ;;  %v1325_v3 = vcombine.high %v280_v60, %v288_v61  ;;  %v1324_v5 = vcombine.low %v280_v60, %v288_v61 }
  0x28   : > { %708 = vmatprep.subr.bf16.mxu0 %v1285_v48  ;;  %749 = vmatprep.subr.bf16.mxu1 %v1287_v49  ;;  %v257_v47 = vld [vmem:[%s1522_s20 + $0xf8] sm:$0xff]  ;;  %v1276_v48 = vcombine.low %v232_v35, %v240_v36  ;;  %v1278_v49 = vcombine.low %v233_v37, %v241_v38 }
  0x29   : > { %738 = vmatprep.mubr.bf16.mxu0 %v1470_v2  ;;  %779 = vmatprep.mubr.bf16.mxu1 %v1470_v2  ;;  %v1295_v51 = vcombine.high %v249_v46, %v257_v47 }
  0x2b   : > { %709 = vmatpush1.bf16.msra.mxu0 %v1284_v54  ;;  %750 = vmatpush1.bf16.msra.mxu1 %v1286_v55  ;;  %v265_v54 = vld [vmem:[%s1522_s20 + $0x138] sm:$0xff] }
  0x2c   : > { %710 = vmatprep.subr.bf16.mxu0 %v1301_v56  ;;  %751 = vmatprep.subr.bf16.mxu1 %v1303_v57  ;;  %v273_v55 = vld [vmem:[%s1522_s20 + $0x178] sm:$0xff]  ;;  %v1292_v56 = vcombine.low %v248_v43, %v256_v44  ;;  %v1294_v57 = vcombine.low %v249_v46, %v257_v47 }
  0x2d   : > { %v1311_v59 = vcombine.high %v265_v54, %v273_v55 }
  0x2f   : > { %711 = vmatpush1.bf16.msra.mxu0 %v1300_v62  ;;  %752 = vmatpush1.bf16.msra.mxu1 %v1302_v63  ;;  %v281_v62 = vld [vmem:[%s1522_s20 + $0x1b8] sm:$0xff] }
  0x30   : > { %712 = vmatprep.subr.bf16.mxu0 %v1317_v0  ;;  %753 = vmatprep.subr.bf16.mxu1 %v1319_v1  ;;  %v289_v63 = vld [vmem:[%s1522_s20 + $0x1f8] sm:$0xff]  ;;  %v1308_v0 = vcombine.low %v264_v52, %v272_v53  ;;  %v1310_v1 = vcombine.low %v265_v54, %v273_v55 }
  0x31   : > { %v1327_v4 = vcombine.high %v281_v62, %v289_v63  ;;  %v1326_v6 = vcombine.low %v281_v62, %v289_v63 }
  0x33   : > { %713 = vmatpush1.bf16.msra.mxu0 %v1316_v7  ;;  %754 = vmatpush1.bf16.msra.mxu1 %v1318_v8 }
  0x34   : > { %788 = vmatprep.subr.bf16.mxu0 %v1273_v9  ;;  %829 = vmatprep.subr.bf16.mxu1 %v1275_v10 }
  0x36   : > { %1330 = vmatmul.mubr.msk.bf16.vlgmr.msra.gmra.mrb[4].mxu0 %vm620_vm0, %v1552_v45  ;;  %1331 = vmatmul.mubr.msk.bf16.vlgmr.msra.gmra.mrb[4].mxu1 %vm620_vm0, %v1552_v45 }
  0x37   : > { %789 = vmatpush1.bf16.msra.mxu0 %v1272_v15  ;;  %830 = vmatpush1.bf16.msra.mxu1 %v1274_v16 }
  0x38   : > { %790 = vmatprep.subr.bf16.mxu0 %v1289_v17  ;;  %831 = vmatprep.subr.bf16.mxu1 %v1291_v18 }
  0x39   : > { %820 = vmatprep.mubr.bf16.mxu0 %v1470_v2  ;;  %861 = vmatprep.mubr.bf16.mxu1 %v1470_v2 }
  0x3b   : > { %791 = vmatpush1.bf16.msra.mxu0 %v1288_v23  ;;  %832 = vmatpush1.bf16.msra.mxu1 %v1290_v24 }
  0x3c   : > { %792 = vmatprep.subr.bf16.mxu0 %v1305_v25  ;;  %833 = vmatprep.subr.bf16.mxu1 %v1307_v26 }
  0x3f   : > { %793 = vmatpush1.bf16.msra.mxu0 %v1304_v31  ;;  %834 = vmatpush1.bf16.msra.mxu1 %v1306_v32 }
  0x40   : > { %794 = vmatprep.subr.bf16.mxu0 %v1321_v33  ;;  %835 = vmatprep.subr.bf16.mxu1 %v1323_v34 }
  0x43   : > { %795 = vmatpush1.bf16.msra.mxu0 %v1320_v39  ;;  %836 = vmatpush1.bf16.msra.mxu1 %v1322_v40 }
  0x44   : > { %870 = vmatprep.subr.bf16.mxu0 %v1277_v41  ;;  %911 = vmatprep.subr.bf16.mxu1 %v1279_v42 }
  0x46   : > { %1332 = vmatmul.mubr.msk.bf16.vlgmr.msra.gmra.mrb[8].mxu0 %vm620_vm0, %v1552_v45  ;;  %1333 = vmatmul.mubr.msk.bf16.vlgmr.msra.gmra.mrb[8].mxu1 %vm620_vm0, %v1552_v45 }
  0x47   : > { %871 = vmatpush1.bf16.msra.mxu0 %v1276_v48  ;;  %912 = vmatpush1.bf16.msra.mxu1 %v1278_v49 }
  0x48   : > { %872 = vmatprep.subr.bf16.mxu0 %v1293_v50  ;;  %913 = vmatprep.subr.bf16.mxu1 %v1295_v51  ;;  %v1471_v50 = vmov 1966171168  }
  0x49   : > { %902 = vmatprep.mubr.bf16.mxu0 %v1470_v2  ;;  %943 = vmatprep.mubr.bf16.mxu1 %v1470_v2  ;;  %v296_v2 = vlaneseq  ;;  %v1069_v51 = vunpack.c.l.s4 %v1471_v50 }
  0x4b   : > { %873 = vmatpush1.bf16.msra.mxu0 %v1292_v56  ;;  %914 = vmatpush1.bf16.msra.mxu1 %v1294_v57  ;;  %v297_v7 = vshrl.u32 %v296_v2, 7  ;;  %v1070_v53 = vunpack.c.0.s8 %v1069_v51 }
  0x4c   : > { %874 = vmatprep.subr.bf16.mxu0 %v1309_v58  ;;  %915 = vmatprep.subr.bf16.mxu1 %v1311_v59 }
  0x4d   : > { %v298_v8 = vsub.s32 0, %v297_v7  ;;  %v1626_v56 = vsub.s32 %v1070_v53, %v297_v7 }
  0x4f   : > { %875 = vmatpush1.bf16.msra.mxu0 %v1308_v0  ;;  %916 = vmatpush1.bf16.msra.mxu1 %v1310_v1 }
  0x50   : > { %876 = vmatprep.subr.bf16.mxu0 %v1325_v3  ;;  %917 = vmatprep.subr.bf16.mxu1 %v1327_v4 }
  0x53   : > { %877 = vmatpush1.bf16.msra.mxu0 %v1324_v5  ;;  %918 = vmatpush1.bf16.msra.mxu1 %v1326_v6 }
  0x56   : > { %1334 = vmatmul.mubr.msk.bf16.vlgmr.msra.gmra.mrb[12].mxu0 %vm620_vm0, %v1552_v45  ;;  %1335 = vmatmul.mubr.msk.bf16.vlgmr.msra.gmra.mrb[12].mxu1 %vm620_vm0, %v1552_v45 }
  0x89   : > { %v294_v9 = vpop.permute.xlu0 %293 }
  0x8a   : > { %v1616_v10 = vrot.slane %v294_v9, %v298_v8 }
  0xf9   : > { %v658_v11 = vpop.f32.mrb[0].mxu0  ;;  %v699_v13 = vpop.f32.mrb[0].mxu1 }
  0xfa   : > { %v659_v12 = vadd.f32 %v658_v11, %v1616_v10  ;;  %v660_v14 = vpop.f32.mrb[1].mxu0  ;;  %v700_v15 = vadd.f32 %v699_v13, %v1616_v10  ;;  %v701_v17 = vpop.f32.mrb[1].mxu1 }
  0xfb   : > { %v661_v16 = vadd.f32 %v660_v14, %v1616_v10  ;;  %v662_v18 = vpop.f32.mrb[2].mxu0  ;;  %v702_v45 = vadd.f32 %v701_v17, %v1616_v10  ;;  %v703_v20 = vpop.f32.mrb[2].mxu1 }
  0xfc   : > { %v1336_v19 = vmul.f32 -1.442695, %v659_v12  ;;  %v663_v21 = vpop.f32.mrb[3].mxu0  ;;  %v1338_v22 = vmul.f32 -1.442695, %v700_v15  ;;  %v704_v24 = vpop.f32.mrb[3].mxu1 }
  0xfd   : > { %v1337_v23 = vmul.f32 -1.442695, %v661_v16  ;;  %v1339_v25 = vmul.f32 -1.442695, %v702_v45 }
  0xfe   : > { %1382 = vpow2.f32 %v1336_v19 }
  0xff   : > { %1384 = vpow2.f32 %v1338_v22 }
 0x100   : > { %1386 = vpow2.f32 %v1337_v23 }
 0x101   : > { %1388 = vpow2.f32 %v1339_v25 }
 0x108   : > { %v1383_v26 = vpop.eup %1382 }
 0x109   : > { %v1385_v27 = vpop.eup %1384  ;;  %v1000_v28 = vadd.f32 1.0, %v1383_v26  ;;  %v740_v29 = vpop.f32.mrb[4].mxu0 }
 0x10a   : > { %v1387_v30 = vpop.eup %1386  ;;  %v1002_v31 = vadd.f32 1.0, %v1385_v27  ;;  %v741_v32 = vadd.f32 %v740_v29, %v1616_v10  ;;  %v781_v33 = vpop.f32.mrb[4].mxu1 }
 0x10b   : > { %v742_v34 = vpop.f32.mrb[5].mxu0  ;;  %v1389_v35 = vpop.eup %1388  ;;  %1390 = vrcp.f32 %v1000_v28  ;;  %v1001_v36 = vadd.f32 1.0, %v1387_v30  ;;  %v782_v37 = vadd.f32 %v781_v33, %v1616_v10 }
 0x10c   : > { %v743_v38 = vadd.f32 %v742_v34, %v1616_v10  ;;  %v783_v39 = vpop.f32.mrb[5].mxu1  ;;  %v744_v40 = vpop.f32.mrb[6].mxu0  ;;  %1392 = vrcp.f32 %v1002_v31  ;;  %v1003_v41 = vadd.f32 1.0, %v1389_v35  ;;  %v1340_v42 = vmul.f32 -1.442695, %v741_v32 }
 0x10d   : > { %v784_v43 = vadd.f32 %v783_v39, %v1616_v10  ;;  %v785_v44 = vpop.f32.mrb[6].mxu1  ;;  %v745_v46 = vpop.f32.mrb[7].mxu0  ;;  %1394 = vrcp.f32 %v1001_v36  ;;  %v1342_v47 = vmul.f32 -1.442695, %v782_v37 }
 0x10e   : > { %v1341_v48 = vmul.f32 -1.442695, %v743_v38  ;;  %v786_v49 = vpop.f32.mrb[7].mxu1  ;;  %1396 = vrcp.f32 %v1003_v41 }
 0x10f   : > { %v1343_v52 = vmul.f32 -1.442695, %v784_v43  ;;  %1398 = vpow2.f32 %v1340_v42 }
 0x110   : > { %1400 = vpow2.f32 %v1342_v47 }
 0x111   : > { %1402 = vpow2.f32 %v1341_v48 }
 0x112   : > { %1404 = vpow2.f32 %v1343_v52 }
 0x115   : > { %v1391_v54 = vpop.eup %1390 }
 0x116   : > { %v1393_v55 = vpop.eup %1392 }
 0x117   : > { %v1395_v57 = vpop.eup %1394 }
 0x118   : > { %v1397_v58 = vpop.eup %1396  ;;  %v1064_v59 = vcombine.low %v1391_v54, %v1395_v57 }
 0x119   : > { %v1399_v60 = vpop.eup %1398  ;;  %v1065_v61 = vcombine.low %v1393_v55, %v1397_v58  ;;  %v822_v62 = vpop.f32.mrb[8].mxu0 }
 0x11a   : > { %v1401_v63 = vpop.eup %1400  ;;  %v1629_v0 = vrot.slane %v1064_v59, %v1626_v56  ;;  %v1004_v1 = vadd.f32 1.0, %v1399_v60  ;;  %v823_v3 = vadd.f32 %v822_v62, %v1616_v10  ;;  %v863_v4 = vpop.f32.mrb[8].mxu1 }
 0x11b   : > { %v824_v5 = vpop.f32.mrb[9].mxu0  ;;  %v1403_v6 = vpop.eup %1402  ;;  %v1633_v2 = vrot.slane %v1065_v61, %v1626_v56  ;;  %v1006_v7 = vadd.f32 1.0, %v1401_v63  ;;  %v864_v8 = vadd.f32 %v863_v4, %v1616_v10 }
 0x11c   : > { %v825_v9 = vadd.f32 %v824_v5, %v1616_v10  ;;  %v865_v11 = vpop.f32.mrb[9].mxu1  ;;  %v826_v12 = vpop.f32.mrb[10].mxu0  ;;  %1406 = vrcp.f32 %v1004_v1  ;;  %v1005_v14 = vadd.f32 1.0, %v1403_v6  ;;  %v1344_v15 = vmul.f32 -1.442695, %v823_v3 }
 0x11d   : > { %v1405_v13 = vpop.eup %1404  ;;  %v866_v16 = vadd.f32 %v865_v11, %v1616_v10  ;;  %v867_v17 = vpop.f32.mrb[10].mxu1  ;;  %v1096_v19 = vcombine.low %v1629_v0, %v1633_v2  ;;  %1408 = vrcp.f32 %v1006_v7  ;;  %v1346_v20 = vmul.f32 -1.442695, %v864_v8 }
 0x11e   : > { %v827_v18 = vpop.f32.mrb[11].mxu0  ;;  %v1007_v45 = vadd.f32 1.0, %v1405_v13  ;;  %v868_v21 = vpop.f32.mrb[11].mxu1  ;;  %1410 = vrcp.f32 %v1005_v14  ;;  %v1345_v22 = vmul.f32 -1.442695, %v825_v9 }
 0x11f   : > { %v1347_v23 = vmul.f32 -1.442695, %v866_v16  ;;  %v1104_v58 = vrot.slane %v1096_v19, %v1626_v56 }
 0x120   : > { %1412 = vrcp.f32 %v1007_v45 }
 0x121   : > { %1414 = vpow2.f32 %v1344_v15 }
 0x122   : > { %1416 = vpow2.f32 %v1346_v20 }
 0x123   : > { %1418 = vpow2.f32 %v1345_v22 }
 0x124   : > { %1420 = vpow2.f32 %v1347_v23 }
 0x126   : > { %v1407_v24 = vpop.eup %1406 }
 0x127   : > { %v1409_v25 = vpop.eup %1408 }
 0x128   : > { %v1411_v26 = vpop.eup %1410 }
 0x129   : > { %v1066_v28 = vcombine.low %v1407_v24, %v1411_v26  ;;  %v904_v29 = vpop.f32.mrb[12].mxu0  ;;  %v945_v33 = vpop.f32.mrb[12].mxu1 }
 0x12a   : > { %v1413_v27 = vpop.eup %1412  ;;  %v905_v32 = vadd.f32 %v904_v29, %v1616_v10  ;;  %v906_v34 = vpop.f32.mrb[13].mxu0  ;;  %v946_v38 = vadd.f32 %v945_v33, %v1616_v10 }
 0x12b   : > { %v1415_v30 = vpop.eup %1414  ;;  %v1067_v31 = vcombine.low %v1409_v25, %v1413_v27  ;;  %v1088_v36 = vrot.slane %v1066_v28, %v1626_v56  ;;  %v907_v39 = vadd.f32 %v906_v34, %v1616_v10  ;;  %v947_v40 = vpop.f32.mrb[13].mxu1 }
 0x12c   : > { %v1417_v35 = vpop.eup %1416  ;;  %v1008_v37 = vadd.f32 1.0, %v1415_v30  ;;  %v908_v41 = vpop.f32.mrb[14].mxu0  ;;  %v948_v46 = vadd.f32 %v947_v40, %v1616_v10  ;;  %v1348_v51 = vmul.f32 -1.442695, %v905_v32  ;;  %v1350_v55 = vmul.f32 -1.442695, %v946_v38 }
 0x12d   : > { %v1419_v42 = vpop.eup %1418  ;;  %v1095_v43 = vrot.slane %v1067_v31, %v1626_v56  ;;  %v1010_v44 = vadd.f32 1.0, %v1417_v35  ;;  %v949_v47 = vpop.f32.mrb[14].mxu1  ;;  %v1349_v57 = vmul.f32 -1.442695, %v907_v39 }
 0x12e   : > { %v909_v48 = vpop.f32.mrb[15].mxu0  ;;  %v1421_v49 = vpop.eup %1420  ;;  %1422 = vrcp.f32 %v1008_v37  ;;  %v1009_v50 = vadd.f32 1.0, %v1419_v42  ;;  %v1351_v10 = vmul.f32 -1.442695, %v948_v46 }
 0x12f   : > { %v950_v52 = vpop.f32.mrb[15].mxu1  ;;  %v1097_v53 = vcombine.low %v1088_v36, %v1095_v43  ;;  %1424 = vrcp.f32 %v1010_v44  ;;  %v1011_v54 = vadd.f32 1.0, %v1421_v49 }
 0x130   : > { %1426 = vrcp.f32 %v1009_v50 }
 0x131   : > { %v1111_v59 = vrot.slane %v1097_v53, %v1626_v56  ;;  %1428 = vrcp.f32 %v1011_v54 }
 0x132   : > { %1430 = vpow2.f32 %v1348_v51 }
 0x133   : > { %v1112_v60 = vcombine.low %v1104_v58, %v1111_v59  ;;  %1432 = vpow2.f32 %v1350_v55 }
 0x134   : > { %1434 = vpow2.f32 %v1349_v57 }
 0x135   : > { %1164 = vst [vmem:[%s1652_s27] sm:$0xff] %v1112_v60  ;;  %1436 = vpow2.f32 %v1351_v10 }
 0x138   : > { %v1423_v61 = vpop.eup %1422 }
 0x139   : > { %v1425_v62 = vpop.eup %1424 }
 0x13a   : > { %v1427_v63 = vpop.eup %1426 }
 0x13b   : > { %v1429_v0 = vpop.eup %1428  ;;  %v1113_v1 = vcombine.low %v1423_v61, %v1427_v63 }
 0x13c   : > { %v1431_v3 = vpop.eup %1430  ;;  %v1114_v4 = vcombine.low %v1425_v62, %v1429_v0 }
 0x13d   : > { %v1433_v5 = vpop.eup %1432  ;;  %v1123_v6 = vrot.slane %v1113_v1, %v1626_v56  ;;  %v1012_v2 = vadd.f32 1.0, %v1431_v3 }
 0x13e   : > { %v1435_v7 = vpop.eup %1434  ;;  %v1130_v8 = vrot.slane %v1114_v4, %v1626_v56  ;;  %v1014_v9 = vadd.f32 1.0, %v1433_v5 }
 0x13f   : > { %v1437_v11 = vpop.eup %1436  ;;  %1438 = vrcp.f32 %v1012_v2  ;;  %v1013_v12 = vadd.f32 1.0, %v1435_v7 }
 0x140   : > { %v1145_v13 = vcombine.low %v1123_v6, %v1130_v8  ;;  %1440 = vrcp.f32 %v1014_v9  ;;  %v1015_v14 = vadd.f32 1.0, %v1437_v11 }
 0x141   : > { %1442 = vrcp.f32 %v1013_v12 }
 0x142   : > { %1444 = vrcp.f32 %v1015_v14  ;;  %v1153_v23 = vrot.slane %v1145_v13, %v1626_v56 }
 0x149   : > { %v1439_v15 = vpop.eup %1438 }
 0x14a   : > { %v1441_v16 = vpop.eup %1440 }
 0x14b   : > { %v1443_v17 = vpop.eup %1442 }
 0x14c   : > { %v1445_v18 = vpop.eup %1444  ;;  %v1115_v19 = vcombine.low %v1439_v15, %v1443_v17 }
 0x14d   : > { %v1116_v45 = vcombine.low %v1441_v16, %v1445_v18 }
 0x14e   : > { %v1137_v20 = vrot.slane %v1115_v19, %v1626_v56 }
 0x14f   : > { %v1144_v21 = vrot.slane %v1116_v45, %v1626_v56 }
 0x151   : > { %v1146_v22 = vcombine.low %v1137_v20, %v1144_v21 }
 0x153   : > { %v1160_v24 = vrot.slane %v1146_v22, %v1626_v56 }
 0x155   : > { %v1161_v25 = vcombine.low %v1153_v23, %v1160_v24 }
 0x157   : > { %1165 = vst [vmem:[%s1652_s27 + $0x8] sm:$0xff] %v1161_v25 }
 0x158 PF: > { %s15_s16 = sadd.s32 1, %s1468_s16   ;;  %s1675_s14 = smov %s1464_s15 }
 0x159   : > { %p12_p5 = scmp.ge.s32.totalorder %s15_s16, 6   ;;  %s1676_s15 = smov %s1678_s2 }
 0x15b   :  { %14 = sbr.rel (!%p12_p5) target bundleno = 3 (0x3), region = 65 }

</bundles_post_ra>
